<compile_context>
chip_gen: v5e
topology: v5e:2x2
jax: 0.10.0
libtpu: 0.0.40
codegen_flags: <defaults>
</compile_context>

<pallas_src>
import functools

import jax
import jax.numpy as jnp
from jax.experimental import pallas as pl
from jax.experimental.pallas import tpu as pltpu


def _round_up(x, m):
    return ((x + m - 1) // m) * m


# ---------------------------------------------------------------------------
# Pallas kernel
# ---------------------------------------------------------------------------
def _make_kernel(starts, cout, lout_p, lane_chunk):
    """starts: static flat shift offsets (one per folded tap group)."""
    G = len(starts)

    def kernel(x_ref, w_ref, b_ref, o_ref, acc_ref):
        # x_ref:  (1, TC, LBIG_P)    bf16  padded, flattened input (this Cin tile)
        # w_ref:  (Kc, GCp, TC)      bf16  packed folded tap weights (VMEM resident)
        # b_ref:  (Cout, 1)          f32   folded bias (sum over convs)
        # o_ref:  (1, Cout, LOUT_P)  f32   output block (resident across k)
        # acc_ref:(GCp, LBIG_P)      f32   pre-shift accumulator scratch
        k = pl.program_id(1)

        @pl.when(k == 0)
        def _init():
            acc_ref[...] = jnp.zeros_like(acc_ref)

        # ONE large MXU matmul per (n, k): (GCp x TC) @ (TC x LBIG_P),
        # f32-accumulated in place in VMEM.  GCp >= 128 keeps the systolic
        # array busy (vs. only Cout rows before).
        acc_ref[...] += jnp.dot(w_ref[k], x_ref[0],
                                preferred_element_type=jnp.float32)

        @pl.when(k == pl.num_programs(1) - 1)
        def _finalize():
            # Apply the static spatial shifts to the (small) f32 results and
            # add the bias once.  Work in static lane chunks so the live
            # accumulator stays well inside the vreg file.
            bias = b_ref[...]                                   # (Cout, 1)
            for c0 in range(0, lout_p, lane_chunk):
                cw = min(lane_chunk, lout_p - c0)               # multiple of 128
                out_c = jnp.broadcast_to(bias, (cout, cw))
                for g in range(G):                              # static unroll
                    out_c = out_c + acc_ref[pl.ds(g * cout, cout),
                                            pl.ds(starts[g] + c0, cw)]
                o_ref[0, :, pl.ds(c0, cw)] = out_c

    return kernel


# ---------------------------------------------------------------------------
# Forward wrapper (matches ClassifierModule.forward semantics)
# ---------------------------------------------------------------------------
def classifier_module_forward(x, weights, biases, dilations, paddings):
    """x: (N, Cin, H, W); weights[i]: (Cout, Cin, 3, 3); biases[i]: (Cout,)."""
    N, Cin, H, W = x.shape
    Cout = weights[0].shape[0]
    assert len(weights) == len(biases) == len(dilations) == len(paddings)
    # Summing the conv outputs requires equal spatial sizes; the standard
    # configuration (padding == dilation) preserves H, W.
    assert all(int(p) == int(d) for p, d in zip(paddings, dilations)), \
        "fused kernel assumes padding == dilation for every conv"

    P = int(max(int(d) for d in dilations))
    Wp = W + 2 * P                       # padded row width (shared row stride)
    Hp2 = H + 2 * P                      # padded height
    Lout = H * Wp                        # flattened output grid (H rows x Wp cols)
    LOUT_P = _round_up(Lout, 128)        # lane-dense output width
    LBIG_P = _round_up(2 * P * Wp + 2 * P + LOUT_P, 128)

    # ---- fold taps: group the 9 * n_convs taps by flat shift offset ----------
    groups = {}
    for wconv, d in zip(weights, dilations):
        d = int(d)
        for ki in range(3):
            for kj in range(3):
                start = P + (P + (ki - 1) * d) * Wp + (kj - 1) * d
                tap = wconv[:, :, ki, kj].astype(jnp.float32)        # (Cout, Cin)
                groups[start] = tap if start not in groups else groups[start] + tap
    starts = tuple(sorted(groups))
    G = len(starts)
    wfold = jnp.stack([groups[s] for s in starts])                   # (G,Cout,Cin) f32

    # ---- channel-reduction tile ----------------------------------------------
    if Cin % 256 == 0 and Cin > 256:
        TC = 256
    elif Cin % 128 == 0 and Cin > 128:
        TC = 128
    else:
        TC = Cin
    Kc = Cin // TC

    # ---- pack G*Cout into the MXU-facing row dimension -----------------------
    GC = G * Cout
    GCp = _round_up(max(GC, 8), 128)
    wpack = jnp.zeros((GCp, Cin), jnp.float32).at[:GC].set(wfold.reshape(GC, Cin))
    wpack = wpack.astype(jnp.bfloat16)
    wtiles = wpack.reshape(GCp, Kc, TC).transpose(1, 0, 2)           # (Kc,GCp,TC)

    # ---- folded bias ----------------------------------------------------------
    bias2d = functools.reduce(lambda a, b: a + b, biases)
    bias2d = bias2d.astype(jnp.float32).reshape(Cout, 1)

    # ---- padded, flattened, lane-aligned input (bf16 MXU operand) ------------
    xp = jnp.pad(x, ((0, 0), (0, 0), (P, P), (P, P)))                # (N,Cin,Hp2,Wp)
    xflat = xp.reshape(N, Cin, Hp2 * Wp)
    tail = LBIG_P - P - Hp2 * Wp
    xbig = jnp.pad(xflat, ((0, 0), (0, 0), (P, tail))).astype(jnp.bfloat16)

    # ---- epilogue lane chunk (keeps live accumulator tiny) -------------------
    CH = min(512, LOUT_P)

    kernel = _make_kernel(starts, Cout, LOUT_P, CH)

    # ---- explicit VMEM budget, capped by per-core capacity (v7x-safe) --------
    est = (2 * TC * LBIG_P * 2                 # x tiles (bf16, double buffered)
           + 2 * Kc * GCp * TC * 2             # packed weights (resident, be safe: 2x)
           + 2 * max(Cout, 8) * LOUT_P * 4     # output blocks (f32)
           + GCp * LBIG_P * 4                  # accumulator scratch (f32)
           + 2 * 8 * 128 * 4)                  # bias block
    try:
        cap = int(pltpu.get_tpu_info().vmem_capacity_bytes)
    except Exception:
        cap = 64 * 2 ** 20                     # v7x lower bound
    vmem_limit = int(min(cap - 16 * 2 ** 20, max(est + 4 * 2 ** 20, 24 * 2 ** 20)))

    out_flat = pl.pallas_call(
        kernel,
        out_shape=jax.ShapeDtypeStruct((N, Cout, LOUT_P), jnp.float32),
        grid_spec=pltpu.PrefetchScalarGridSpec(
            num_scalar_prefetch=0,
            grid=(N, Kc),                               # reduction (Cin tiles) last
            in_specs=[
                pl.BlockSpec((1, TC, LBIG_P), lambda n, k: (n, k, 0)),
                pl.BlockSpec((Kc, GCp, TC), lambda n, k: (0, 0, 0)),   # fully resident
                pl.BlockSpec((Cout, 1), lambda n, k: (0, 0)),
            ],
            out_specs=pl.BlockSpec((1, Cout, LOUT_P), lambda n, k: (n, 0, 0)),
            scratch_shapes=[pltpu.VMEM((GCp, LBIG_P), jnp.float32)],
        ),
        compiler_params=pltpu.CompilerParams(
            dimension_semantics=("parallel", "arbitrary"),
            vmem_limit_bytes=vmem_limit,
        ),
    )(xbig, wtiles, bias2d)

    # drop the lane-padding tail and the horizontal padding columns
    out = out_flat[:, :, :Lout].reshape(N, Cout, H, Wp)[:, :, :, P:P + W]
    return out


# ---------------------------------------------------------------------------
# References
# ---------------------------------------------------------------------------
def classifier_reference(x, weights, biases, dilations, paddings, precision=None):
    """Pure-f32 reference mirroring the PyTorch forward."""
    out = None
    for w, b, d, p in zip(weights, biases, dilations, paddings):
        y = jax.lax.conv_general_dilated(
            x, w, window_strides=(1, 1), padding=((p, p), (p, p)),
            rhs_dilation=(int(d), int(d)),
            dimension_numbers=("NCHW", "OIHW", "NCHW"),
            precision=precision)
        y = y + b[None, :, None, None]
        out = y if out is None else out + y
    return out


def folded_bf16_reference(x, weights, biases, dilations):
    """Matches the kernel's quantization exactly: fold taps per shift offset in
    f32, cast folded weights + padded activations to bf16, accumulate in f32."""
    N, Cin, H, W = x.shape
    Cout = weights[0].shape[0]
    P = int(max(int(d) for d in dilations))
    xp = jnp.pad(x, ((0, 0), (0, 0), (P, P), (P, P)))
    xp = xp.astype(jnp.bfloat16).astype(jnp.float32)
    groups = {}
    for wconv, d in zip(weights, dilations):
        d = int(d)
        for ki in range(3):
            for kj in range(3):
                off = ((ki - 1) * d, (kj - 1) * d)
                tap = wconv[:, :, ki, kj].astype(jnp.float32)
                groups[off] = tap if off not in groups else groups[off] + tap
    bias_sum = functools.reduce(lambda a, b: a + b, biases).astype(jnp.float32)
    out = jnp.broadcast_to(bias_sum[None, :, None, None], (N, Cout, H, W))
    for (di, dj), tap in groups.items():
        tap = tap.astype(jnp.bfloat16).astype(jnp.float32)
        xs = xp[:, :, P + di:P + di + H, P + dj:P + dj + W]
        out = out + jnp.einsum("oc,nchw->nohw", tap, xs,
                               precision=jax.lax.Precision.HIGHEST)
    return out


if __name__ == "__main__":
    key = jax.random.PRNGKey(0)

    # Small shapes consistent with the module (original hard-codes Cin=2048;
    # a smaller stand-in still exercises the Cin-tile reduction axis, Kc=2).
    N, Cin, Cout, H, W = 2, 256, 8, 16, 16
    dilations = (1, 2, 4)
    paddings = (1, 2, 4)

    nconv = len(dilations)
    keys = jax.random.split(key, 1 + 2 * nconv)
    x = jax.random.normal(keys[0], (N, Cin, H, W), jnp.float32)
    # module init: weight ~ N(0, 0.01); bias small
    weights = [0.01 * jax.random.normal(keys[1 + i], (Cout, Cin, 3, 3), jnp.float32)
               for i in range(nconv)]
    biases = [0.01 * jax.random.normal(keys[1 + nconv + i], (Cout,), jnp.float32)
              for i in range(nconv)]

    out = classifier_module_forward(x, weights, biases, dilations, paddings)
    jax.block_until_ready(out)
    assert out.shape == (N, Cout, H, W)

    # Tight check: reference with identical quantization (fold -> bf16 -> f32 acc).
    ref_tight = folded_bf16_reference(x, weights, biases, dilations)
    err_tight = float(jnp.max(jnp.abs(out - ref_tight)))
    assert err_tight < 5e-3, f"kernel vs fold-matched bf16 reference: max abs err = {err_tight}"

    # Loose check: full-f32 module semantics (covers bf16 quantization error).
    ref = classifier_reference(x, weights, biases, dilations, paddings,
                               precision=jax.lax.Precision.HIGHEST)
    err = float(jnp.max(jnp.abs(out - ref)))
    assert err < 5e-2, f"kernel vs f32 reference: max abs err = {err}"

    print("KERNEL_OK")
</pallas_src>

<mosaic_0001>
module attributes {stable_mosaic.version = 11 : i64} {
  func.func @kernel(%arg0: i32, %arg1: i32, %arg2: memref<1x128x640xbf16, #tpu.memory_space<vmem>>, %arg3: memref<2x256x128xbf16, #tpu.memory_space<vmem>>, %arg4: memref<8x1xf32, #tpu.memory_space<vmem>>, %arg5: memref<1x8x384xf32, #tpu.memory_space<vmem>>, %arg6: memref<256x640xf32, #tpu.memory_space<vmem>>) attributes {dimension_semantics = [#tpu.dimension_semantics<parallel>, #tpu.dimension_semantics<arbitrary>], iteration_bounds = array<i64: 2, 2>, scalar_prefetch = 0 : i64, scratch_operands = 1 : i64, tpu.core_type = #tpu.core_type<tc>, window_params = [{transform_indices = @transform_0, window_bounds = array<i64: 1, 128, 640>}, {pipeline_mode = #tpu.pipeline_mode<synchronous>, transform_indices = @transform_1, window_bounds = array<i64: 2, 256, 128>}, {pipeline_mode = #tpu.pipeline_mode<synchronous>, transform_indices = @transform_2, window_bounds = array<i64: 8, 1>}, {transform_indices = @transform_3, window_bounds = array<i64: 1, 8, 384>}]} {
    %c0_i32 = arith.constant 0 : i32
    %0 = arith.cmpi eq, %arg1, %c0_i32 : i32
    %1 = arith.extui %0 : i1 to i32
    %c0_i32_0 = arith.constant 0 : i32
    %2 = arith.cmpi ne, %1, %c0_i32_0 : i32
    scf.if %2 {
      %cst_10 = arith.constant 0.000000e+00 : f32
      %15 = vector.broadcast %cst_10 : f32 to vector<256x640xf32>
      %c0_11 = arith.constant 0 : index
      %c0_12 = arith.constant 0 : index
      %16 = vector.load %arg6[%c0_11, %c0_12] : memref<256x640xf32, #tpu.memory_space<vmem>>, vector<256x640xf32>
      tpu.vector_store %arg6[%c0_11, %c0_12], %15 {strides = array<i32>} : memref<256x640xf32, #tpu.memory_space<vmem>>, vector<256x640xf32>,
    } else {
    }
    %c0 = arith.constant 0 : index
    %c0_1 = arith.constant 0 : index
    %3 = vector.load %arg6[%c0, %c0_1] : memref<256x640xf32, #tpu.memory_space<vmem>>, vector<256x640xf32>
    %4 = arith.index_cast %arg1 : i32 to index
    %c0_2 = arith.constant 0 : index
    %c0_3 = arith.constant 0 : index
    %5 = vector.load %arg3[%4, %c0_2, %c0_3] : memref<2x256x128xbf16, #tpu.memory_space<vmem>>, vector<1x256x128xbf16>
    %6 = vector.shape_cast %5 : vector<1x256x128xbf16> to vector<256x128xbf16>
    %c0_4 = arith.constant 0 : index
    %c0_5 = arith.constant 0 : index
    %c0_6 = arith.constant 0 : index
    %7 = vector.load %arg2[%c0_4, %c0_5, %c0_6] : memref<1x128x640xbf16, #tpu.memory_space<vmem>>, vector<1x128x640xbf16>
    %8 = vector.shape_cast %7 : vector<1x128x640xbf16> to vector<128x640xbf16>
    %cst = arith.constant dense<0.000000e+00> : vector<256x640xf32>
    %9 = tpu.matmul %6, %8, %cst {dimension_numbers = #tpu.dot_dimension_numbers<[1], [0], [0], [1], [0, 0, 1, 1], [], []>} : vector<256x128xbf16>, vector<128x640xbf16>, vector<256x640xf32> -> vector<256x640xf32>
    %10 = arith.addf %3, %9 : vector<256x640xf32>
    %c0_7 = arith.constant 0 : index
    %c0_8 = arith.constant 0 : index
    %11 = vector.load %arg6[%c0_7, %c0_8] : memref<256x640xf32, #tpu.memory_space<vmem>>, vector<256x640xf32>
    tpu.vector_store %arg6[%c0_7, %c0_8], %10 {strides = array<i32>} : memref<256x640xf32, #tpu.memory_space<vmem>>, vector<256x640xf32>,
    %c1_i32 = arith.constant 1 : i32
    %12 = arith.cmpi eq, %arg1, %c1_i32 : i32
    %13 = arith.extui %12 : i1 to i32
    %c0_i32_9 = arith.constant 0 : i32
    %14 = arith.cmpi ne, %13, %c0_i32_9 : i32
    scf.if %14 {
      %c0_10 = arith.constant 0 : index
      %c0_11 = arith.constant 0 : index
      %15 = vector.load %arg4[%c0_10, %c0_11] : memref<8x1xf32, #tpu.memory_space<vmem>>, vector<8x1xf32>
      %16 = vector.shape_cast %15 : vector<8x1xf32> to vector<8x1xf32>
      %17 = vector.broadcast %16 : vector<8x1xf32> to vector<8x384xf32>
      %c0_12 = arith.constant 0 : index
      %c0_13 = arith.constant 0 : index
      %18 = vector.load %arg6[%c0_12, %c0_13] : memref<256x640xf32, #tpu.memory_space<vmem>>, vector<8x384xf32>
      %19 = arith.addf %17, %18 : vector<8x384xf32>
      %c8 = arith.constant 8 : index
      %c4 = arith.constant 4 : index
      %20 = vector.load %arg6[%c8, %c4] : memref<256x640xf32, #tpu.memory_space<vmem>>, vector<8x384xf32>
      %21 = arith.addf %19, %20 : vector<8x384xf32>
      %c16 = arith.constant 16 : index
      %c8_14 = arith.constant 8 : index
      %22 = vector.load %arg6[%c16, %c8_14] : memref<256x640xf32, #tpu.memory_space<vmem>>, vector<8x384xf32>
      %23 = arith.addf %21, %22 : vector<8x384xf32>
      %c24 = arith.constant 24 : index
      %c50 = arith.constant 50 : index
      %24 = vector.load %arg6[%c24, %c50] : memref<256x640xf32, #tpu.memory_space<vmem>>, vector<8x384xf32>
      %25 = arith.addf %23, %24 : vector<8x384xf32>
      %c32 = arith.constant 32 : index
      %c52 = arith.constant 52 : index
      %26 = vector.load %arg6[%c32, %c52] : memref<256x640xf32, #tpu.memory_space<vmem>>, vector<8x384xf32>
      %27 = arith.addf %25, %26 : vector<8x384xf32>
      %c40 = arith.constant 40 : index
      %c54 = arith.constant 54 : index
      %28 = vector.load %arg6[%c40, %c54] : memref<256x640xf32, #tpu.memory_space<vmem>>, vector<8x384xf32>
      %29 = arith.addf %27, %28 : vector<8x384xf32>
      %c48 = arith.constant 48 : index
      %c75 = arith.constant 75 : index
      %30 = vector.load %arg6[%c48, %c75] : memref<256x640xf32, #tpu.memory_space<vmem>>, vector<8x384xf32>
      %31 = arith.addf %29, %30 : vector<8x384xf32>
      %c56 = arith.constant 56 : index
      %c76 = arith.constant 76 : index
      %32 = vector.load %arg6[%c56, %c76] : memref<256x640xf32, #tpu.memory_space<vmem>>, vector<8x384xf32>
      %33 = arith.addf %31, %32 : vector<8x384xf32>
      %c64 = arith.constant 64 : index
      %c77 = arith.constant 77 : index
      %34 = vector.load %arg6[%c64, %c77] : memref<256x640xf32, #tpu.memory_space<vmem>>, vector<8x384xf32>
      %35 = arith.addf %33, %34 : vector<8x384xf32>
      %c72 = arith.constant 72 : index
      %c96 = arith.constant 96 : index
      %36 = vector.load %arg6[%c72, %c96] : memref<256x640xf32, #tpu.memory_space<vmem>>, vector<8x384xf32>
      %37 = arith.addf %35, %36 : vector<8x384xf32>
      %c80 = arith.constant 80 : index
      %c98 = arith.constant 98 : index
      %38 = vector.load %arg6[%c80, %c98] : memref<256x640xf32, #tpu.memory_space<vmem>>, vector<8x384xf32>
      %39 = arith.addf %37, %38 : vector<8x384xf32>
      %c88 = arith.constant 88 : index
      %c99 = arith.constant 99 : index
      %40 = vector.load %arg6[%c88, %c99] : memref<256x640xf32, #tpu.memory_space<vmem>>, vector<8x384xf32>
      %41 = arith.addf %39, %40 : vector<8x384xf32>
      %c96_15 = arith.constant 96 : index
      %c100 = arith.constant 100 : index
      %42 = vector.load %arg6[%c96_15, %c100] : memref<256x640xf32, #tpu.memory_space<vmem>>, vector<8x384xf32>
      %43 = arith.addf %41, %42 : vector<8x384xf32>
      %c104 = arith.constant 104 : index
      %c101 = arith.constant 101 : index
      %44 = vector.load %arg6[%c104, %c101] : memref<256x640xf32, #tpu.memory_space<vmem>>, vector<8x384xf32>
      %45 = arith.addf %43, %44 : vector<8x384xf32>
      %c112 = arith.constant 112 : index
      %c102 = arith.constant 102 : index
      %46 = vector.load %arg6[%c112, %c102] : memref<256x640xf32, #tpu.memory_space<vmem>>, vector<8x384xf32>
      %47 = arith.addf %45, %46 : vector<8x384xf32>
      %c120 = arith.constant 120 : index
      %c104_16 = arith.constant 104 : index
      %48 = vector.load %arg6[%c120, %c104_16] : memref<256x640xf32, #tpu.memory_space<vmem>>, vector<8x384xf32>
      %49 = arith.addf %47, %48 : vector<8x384xf32>
      %c128 = arith.constant 128 : index
      %c123 = arith.constant 123 : index
      %50 = vector.load %arg6[%c128, %c123] : memref<256x640xf32, #tpu.memory_space<vmem>>, vector<8x384xf32>
      %51 = arith.addf %49, %50 : vector<8x384xf32>
      %c136 = arith.constant 136 : index
      %c124 = arith.constant 124 : index
      %52 = vector.load %arg6[%c136, %c124] : memref<256x640xf32, #tpu.memory_space<vmem>>, vector<8x384xf32>
      %53 = arith.addf %51, %52 : vector<8x384xf32>
      %c144 = arith.constant 144 : index
      %c125 = arith.constant 125 : index
      %54 = vector.load %arg6[%c144, %c125] : memref<256x640xf32, #tpu.memory_space<vmem>>, vector<8x384xf32>
      %55 = arith.addf %53, %54 : vector<8x384xf32>
      %c152 = arith.constant 152 : index
      %c146 = arith.constant 146 : index
      %56 = vector.load %arg6[%c152, %c146] : memref<256x640xf32, #tpu.memory_space<vmem>>, vector<8x384xf32>
      %57 = arith.addf %55, %56 : vector<8x384xf32>
      %c160 = arith.constant 160 : index
      %c148 = arith.constant 148 : index
      %58 = vector.load %arg6[%c160, %c148] : memref<256x640xf32, #tpu.memory_space<vmem>>, vector<8x384xf32>
      %59 = arith.addf %57, %58 : vector<8x384xf32>
      %c168 = arith.constant 168 : index
      %c150 = arith.constant 150 : index
      %60 = vector.load %arg6[%c168, %c150] : memref<256x640xf32, #tpu.memory_space<vmem>>, vector<8x384xf32>
      %61 = arith.addf %59, %60 : vector<8x384xf32>
      %c176 = arith.constant 176 : index
      %c192 = arith.constant 192 : index
      %62 = vector.load %arg6[%c176, %c192] : memref<256x640xf32, #tpu.memory_space<vmem>>, vector<8x384xf32>
      %63 = arith.addf %61, %62 : vector<8x384xf32>
      %c184 = arith.constant 184 : index
      %c196 = arith.constant 196 : index
      %64 = vector.load %arg6[%c184, %c196] : memref<256x640xf32, #tpu.memory_space<vmem>>, vector<8x384xf32>
      %65 = arith.addf %63, %64 : vector<8x384xf32>
      %c192_17 = arith.constant 192 : index
      %c200 = arith.constant 200 : index
      %66 = vector.load %arg6[%c192_17, %c200] : memref<256x640xf32, #tpu.memory_space<vmem>>, vector<8x384xf32>
      %67 = arith.addf %65, %66 : vector<8x384xf32>
      %c0_18 = arith.constant 0 : index
      %c0_19 = arith.constant 0 : index
      %c0_20 = arith.constant 0 : index
      %68 = vector.load %arg5[%c0_18, %c0_19, %c0_20] : memref<1x8x384xf32, #tpu.memory_space<vmem>>, vector<1x8x384xf32>
      %69 = vector.shape_cast %68 : vector<1x8x384xf32> to vector<8x384xf32>
      %70 = vector.shape_cast %67 : vector<8x384xf32> to vector<1x8x384xf32>
      tpu.vector_store %arg5[%c0_18, %c0_19, %c0_20], %70 {strides = array<i32>} : memref<1x8x384xf32, #tpu.memory_space<vmem>>, vector<1x8x384xf32>,
    } else {
    }
    return
  }
  func.func @transform_0(%arg0: i32, %arg1: i32) -> (i32, i32, i32) {
    %c0_i32 = arith.constant 0 : i32
    %c0_i32_0 = arith.constant 0 : i32
    return %arg0, %arg1, %c0_i32 : i32, i32, i32
  }
  func.func @transform_1(%arg0: i32, %arg1: i32) -> (i32, i32, i32) {
    %c0_i32 = arith.constant 0 : i32
    %c0_i32_0 = arith.constant 0 : i32
    %c0_i32_1 = arith.constant 0 : i32
    %c0_i32_2 = arith.constant 0 : i32
    return %c0_i32, %c0_i32_0, %c0_i32_1 : i32, i32, i32
  }
  func.func @transform_2(%arg0: i32, %arg1: i32) -> (i32, i32) {
    %c0_i32 = arith.constant 0 : i32
    %c0_i32_0 = arith.constant 0 : i32
    %c0_i32_1 = arith.constant 0 : i32
    return %c0_i32, %c0_i32_0 : i32, i32
  }
  func.func @transform_3(%arg0: i32, %arg1: i32) -> (i32, i32, i32) {
    %c0_i32 = arith.constant 0 : i32
    %c0_i32_0 = arith.constant 0 : i32
    %c0_i32_1 = arith.constant 0 : i32
    return %arg0, %c0_i32, %c0_i32_0 : i32, i32, i32
  }
}

</mosaic_0001>

<bundles_post_ra>
// kernel: tpu_custom_call.1
= control target key start
LH: loop header
LB: loop body
LE: loop exit
PB: predicated region body
PF: predicated region fallthrough
CT: control target
= control target key end

     0   :  { %s3786_s0 = inlined_call_operand.hbm [shape: bf16[2,256,640], index: 0, kind: input, shape index: {}]   ;;  %s3787_s1 = inlined_call_operand.hbm [shape: bf16[2,256,128], index: 1, kind: input, shape index: {}]   ;;  %s3788_s2 = inlined_call_operand.vmem [shape: f32[8,1], index: 2, kind: input, shape index: {}]   ;;  %s3789_s3 = inlined_call_operand.hbm [shape: f32[2,8,384], index: 3, kind: output, shape index: {}]  }
   0x1   :  { %3797 = sst [smem:[#allocation18_spill]] %s3787_s1 }
   0x2   :  { %3798 = sst [smem:[#allocation19_spill]] %s3788_s2 }
   0x3   :  { %3799 = sst [smem:[#allocation20_spill]] %s3789_s3 }
   0x4   :  { %8 = vsyncpa [#allocation4], 0 }
   0x5   :  { %10 = vsyncpa [#allocation4 + $0x1], 0 }
   0x6   :  { %11 = vsyncpa [#allocation7], 0 }
   0x7   :  { %12 = vsyncpa [#allocation5], 0 }
   0x8   :  { %14 = vsyncpa [#allocation5 + $0x1], 0  ;;  %s3169_s12 = smov 0   ;;  %s3171_s13 = smov 0  }
   0x9   :  { %s3173_s14 = smov 0   ;;  %s3175_s15 = smov 0  }
   0xa   :  { %s3177_s16 = smov 0   ;;  %s3179_s17 = smov 0  }
   0xb   :  { %s3181_s18 = smov 0   ;;  %s3183_s19 = smov 0  }
   0xc   :  { %s3185_s20 = smov 0   ;;  %s3187_s21 = smov 0  }
   0xd   :  { %s3189_s22 = smov 0  }
   0xe LB: > { %3800 = sst [smem:[#allocation12_spill]] %s3076_s12  ;;  %s2458_s23 = sadd.s32 4294967295, %s3116_s22   ;;  %s3116_s22 = sphi %s3189_s22, %s20_s22   ;;  %s3112_s21 = sphi %s3187_s21, %s3830_s21   ;;  %s3108_s20 = sphi %s3185_s20, %s3829_s20   ;;  %s3104_s19 = sphi %s3183_s19, %s3828_s19   ;;  %s3100_s18 = sphi %s3181_s18, %s3827_s18   ;;  %s3096_s17 = sphi %s3179_s17, %s3826_s17   ;;  %s3092_s16 = sphi %s3177_s16, %s3825_s16   ;;  %s3088_s15 = sphi %s3175_s15, %s3824_s15   ;;  %s3084_s14 = sphi %s3173_s14, %s3823_s14   ;;  %s3080_s13 = sphi %s3171_s13, %s3822_s13   ;;  %s3076_s12 = sphi %s3169_s12, %s3821_s12  }
   0xf   : > { %3801 = sst [smem:[#allocation13_spill]] %s3104_s19  ;;  %s2459_s24 = sadd.s32 4294967294, %s3116_s22  }
  0x10   : > { %p54_p0 = scmp.ne.s32.totalorder %s3092_s16, %s3088_s15  ;;  %p3225_p1 = scmp.eq.s32.totalorder %s2458_s23, 0 }
  0x11   : > { %p119_p2 = scmp.ne.s32.totalorder %s3084_s14, %s3080_s13  ;;  %p120_p3 = scmp.eq.s32.totalorder %s2458_s23, 3 }
  0x12   : > { %p3233_p4 = por %p3225_p1, %p54_p0  ;;  %p125_p5 = scmp.ne.s32.totalorder %s3080_s13, %s3076_s12 }
  0x13   : > { %p3239_p6 = por %p120_p3, %p119_p2  ;;  %p126_p7 = scmp.eq.s32.totalorder %s2459_s24, 3 }
  0x14   : > { %p2460_p8 = scmp.ge.s32.totalorder %s3116_s22, 1  ;;  %p133_p9 = scmp.lt.s32.totalorder %s3116_s22, 5 }
  0x15   : > { %s3804_s27 = scalar_select %p3239_p6, 1, 0 }
  0x16   : > { %p3245_p10 = por %p126_p7, %p125_p5  ;;  %p3249_p11 = pnand %p2460_p8, %p133_p9 }
  0x17   : > { %3805 = sst [smem:[#allocation14_spill]] %s3804_s27  ;;  %s3118_s6 = smov [#allocation6]  }
  0x18   : > { %s3806_s28 = scalar_select %p3245_p10, 1, 0 }
  0x19   : > { %s3809_s1 = sld [smem:[#allocation18_spill]]  ;;  %p2794_p12 = pneg %p3249_p11 }
  0x1a   : > { %3807 = sst [smem:[#allocation15_spill]] %s3806_s28  ;;  %s146_s7 = sshll.u32 %s3118_s6, 4  ;;  %s147_s7 = int_to_ptr.vmem [resolvable:$true] %s146_s7 }
  0x1b   : > { %p2795_p13 = pnand %p2794_p12, %p3225_p1  ;;  %s3119_s8 = smov 64  }
  0x1c   : > { %s3120_s9 = smov 4   ;;  %s29_s10 = sadd.s32 1, %s3108_s20 }
  0x1d   : > { %s32_s11 = sadd.s32 1, %s3112_s21  ;;  %p30_p0 = scmp.ge.s32.totalorder %s29_s10, 2 }
  0x1e   : > { %s41_s15 = sadd.s32 1, %s3096_s17  ;;  %p48_p2 = scmp.ne.s32.totalorder %s3096_s17, %s3092_s16 }
  0x1f   : > { %s144_s5 = sshll.u32 %s3809_s1, 4  ;;  %p49_p3 = scmp.eq.s32.totalorder %s3116_s22, 0  ;;  %s145_s5 = int_to_ptr.hbm [resolvable:$true] %s144_s5 }
  0x20   : > { %2797 = dma.hbm_to_vmem [thread:$0]  (!%p2795_p13), %s145_s5, 4096, %s147_s7, [#allocation7], %s3119_s8, %s3119_s8, %s3120_s9  }
  0x21   : > { %s3832_s10 = smov (%p30_p0, %s29_s10), 0  ;;  %s3834_s11 = smov (!%p30_p0, %s32_s11), %s3112_s21 }
  0x22   : > { %3810 = sst [smem:[#allocation16_spill]] %s3832_s10  ;;  %s37_s23 = ssub.s32 %s3108_s20, %s3832_s10 }
  0x23   : > { %p3271_p5 = por %p49_p3, %p48_p2  ;;  %p34_p7 = scmp.ge.s32.totalorder %s3834_s11, 2 }
  0x24   : > { %s109_s30 = sadd.s32 1, %s3084_s14  ;;  %p2807_p8 = scmp.lt.s32.totalorder %s3116_s22, 4 }
  0x25   : > { %s163_s4 = sand.u32 1, %s3096_s17   ;;  %s3836_s11 = smov (%p34_p7, %s3834_s11), 0 }
  0x26   : > { %3812 = sst [smem:[#allocation17_spill]] %s3836_s11  ;;  %s2780_s5 = smul.u32 320, %s163_s4 }
  0x27   : > { %s36_s6 = ssub.s32 %s3112_s21, %s3836_s11  ;;  %s2781_s7 = smul.u32 80, %s3108_s20 }
  0x28   : > { %s38_s8 = sor.u32 %s37_s23, %s36_s6  ;;  %p107_p9 = scmp.eq.s32.totalorder %s36_s6, 0 }
  0x29   : > { %p39_p12 = scmp.eq.s32.totalorder %s38_s8, 0  ;;  %s2782_s10 = smul.u32 160, %s3112_s21 }
  0x2a   : > { %s3284_s9 = scalar_select %p107_p9, %s3084_s14, %s109_s30  }
  0x2b   : > { %s3287_s1 = scalar_select %p39_p12, %s3096_s17, %s41_s15  }
  0x2c   : > { %s167_s28 = scalar_lea.vmem [#allocation3], %s2780_s5  ;;  %p2799_p13 = pnand %p2807_p8, %p3271_p5 }
  0x2d   : > { %s178_s12 = sshll.u32 %s167_s28, 4  ;;  %s173_s3 = sadd.s32 %s2782_s10, %s2781_s7  ;;  %s179_s12 = int_to_ptr.vmem [resolvable:$true] %s178_s12 }
  0x2e   : > { %s2465_s27 = sshll.u32 %s173_s3, 2  ;;  %s164_s6 = scalar_lea.sflag [#allocation4], %s163_s4 }
  0x2f   : > { %s175_s11 = scalar_lea.hbm %s3786_s0, %s2465_s27  ;;  %s3121_s30 = smov 320  }
  0x30   : > { %s176_s23 = sshll.u32 %s175_s11, 4  ;;  %s3122_s8 = smov 20   ;;  %s177_s23 = int_to_ptr.hbm [resolvable:$true] %s176_s23 }
  0x31   : > { %2801 = dma.hbm_to_vmem [thread:$0]  (!%p2799_p13), %s177_s23, 5120, %s179_s12, %s164_s6, %s3121_s30, %s3121_s30, %s3122_s8  }
  0x32   : > { %190 = sbr.rel (%p3249_p11) target bundleno = 1108 (0x454), region = 32  ;;  %s192_s28 = sand.u32 (!%p3249_p11), 1, %s3092_s16  }
  0x33   : > { %s2783_s15 = smul.u32 (!%p3249_p11), 320, %s192_s28  ;;  %s193_s24 = scalar_lea.sflag (!%p3249_p11), [#allocation4], %s192_s28 }
  0x35   : > { %s3300_s10 = scalar_lea.vmem (!%p3249_p11), [#allocation3], %s2783_s15 }
  0x37   : > { %3063 = dma.done.wait (%p3233_p4), %s193_s24, 5120  }
  0x38   : > { %3065 = vsyncadd (%p3233_p4), %s193_s24, 4294962176 }
  0x39   : > { %3067 = dma.done.wait (%p3225_p1), [#allocation7], 4096  }
  0x3a   : > { %3069 = vsyncadd (%p3225_p1), [#allocation7], 4294963200  ;;  %s222_s2 = sand.u32 1, %s3080_s13   ;;  %p2468_p11 = scmp.ne.s32.totalorder %s3100_s18, 0 }
  0x3b   : > { %s2784_s3 = smul.u32 24, %s222_s2 }
  0x3c   : > { %229 = sbr.rel (%p2468_p11) target bundleno = 226 (0xe2), region = 44 }
  0x3d   : > { %s3313_s12 = scalar_lea.vmem [#allocation8], %s2784_s3 }
  0x41   : > { %v3123_v0 = vmov 0.0  }
  0x42   : > { %230 = vst [vmem:[#allocation2 + $0x2b0] sm:$0xff] %v3123_v0 }
  0x43   : > { %231 = vst [vmem:[#allocation2 + $0x3b0] sm:$0xff] %v3123_v0 }
  0x44   : > { %232 = vst [vmem:[#allocation2 + $0x4d8] sm:$0xff] %v3123_v0 }
  0x45   : > { %233 = vst [vmem:[#allocation2 + $0x18] sm:$0xff] %v3123_v0 }
  0x46   : > { %234 = vst [vmem:[#allocation2 + $0x450] sm:$0xff] %v3123_v0 }
  0x47   : > { %235 = vst [vmem:[#allocation2 + $0x328] sm:$0xff] %v3123_v0 }
  0x48   : > { %236 = vst [vmem:[#allocation2 + $0x440] sm:$0xff] %v3123_v0 }
  0x49   : > { %237 = vst [vmem:[#allocation2 + $0x378] sm:$0xff] %v3123_v0 }
  0x4a   : > { %238 = vst [vmem:[#allocation2 + $0x108] sm:$0xff] %v3123_v0 }
  0x4b   : > { %239 = vst [vmem:[#allocation2 + $0x488] sm:$0xff] %v3123_v0 }
  0x4c   : > { %240 = vst [vmem:[#allocation2 + $0x310] sm:$0xff] %v3123_v0 }
  0x4d   : > { %241 = vst [vmem:[#allocation2 + $0x4f0] sm:$0xff] %v3123_v0 }
  0x4e   : > { %242 = vst [vmem:[#allocation2 + $0x308] sm:$0xff] %v3123_v0 }
  0x4f   : > { %243 = vst [vmem:[#allocation2 + $0x2a8] sm:$0xff] %v3123_v0 }
  0x50   : > { %244 = vst [vmem:[#allocation2 + $0x398] sm:$0xff] %v3123_v0 }
  0x51   : > { %245 = vst [vmem:[#allocation2 + $0x60] sm:$0xff] %v3123_v0 }
  0x52   : > { %246 = vst [vmem:[#allocation2 + $0xd8] sm:$0xff] %v3123_v0 }
  0x53   : > { %247 = vst [vmem:[#allocation2 + $0x388] sm:$0xff] %v3123_v0 }
  0x54   : > { %248 = vst [vmem:[#allocation2 + $0x160] sm:$0xff] %v3123_v0 }
  0x55   : > { %249 = vst [vmem:[#allocation2 + $0x220] sm:$0xff] %v3123_v0 }
  0x56   : > { %250 = vst [vmem:[#allocation2 + $0xa0] sm:$0xff] %v3123_v0 }
  0x57   : > { %251 = vst [vmem:[#allocation2 + $0x360] sm:$0xff] %v3123_v0 }
  0x58   : > { %252 = vst [vmem:[#allocation2 + $0x4f8] sm:$0xff] %v3123_v0 }
  0x59   : > { %253 = vst [vmem:[#allocation2 + $0x380] sm:$0xff] %v3123_v0 }
  0x5a   : > { %254 = vst [vmem:[#allocation2 + $0x458] sm:$0xff] %v3123_v0 }
  0x5b   : > { %255 = vst [vmem:[#allocation2 + $0x4a0] sm:$0xff] %v3123_v0 }
  0x5c   : > { %256 = vst [vmem:[#allocation2 + $0x390] sm:$0xff] %v3123_v0 }
  0x5d   : > { %257 = vst [vmem:[#allocation2 + $0xb8] sm:$0xff] %v3123_v0 }
  0x5e   : > { %258 = vst [vmem:[#allocation2 + $0x270] sm:$0xff] %v3123_v0 }
  0x5f   : > { %259 = vst [vmem:[#allocation2 + $0x480] sm:$0xff] %v3123_v0 }
  0x60   : > { %260 = vst [vmem:[#allocation2 + $0x1a8] sm:$0xff] %v3123_v0 }
  0x61   : > { %261 = vst [vmem:[#allocation2 + $0x2a0] sm:$0xff] %v3123_v0 }
  0x62   : > { %262 = vst [vmem:[#allocation2 + $0x38] sm:$0xff] %v3123_v0 }
  0x63   : > { %263 = vst [vmem:[#allocation2 + $0x3f8] sm:$0xff] %v3123_v0 }
  0x64   : > { %264 = vst [vmem:[#allocation2 + $0xb0] sm:$0xff] %v3123_v0 }
  0x65   : > { %265 = vst [vmem:[#allocation2 + $0x320] sm:$0xff] %v3123_v0 }
  0x66   : > { %266 = vst [vmem:[#allocation2 + $0x188] sm:$0xff] %v3123_v0 }
  0x67   : > { %267 = vst [vmem:[#allocation2 + $0x210] sm:$0xff] %v3123_v0 }
  0x68   : > { %268 = vst [vmem:[#allocation2 + $0x78] sm:$0xff] %v3123_v0 }
  0x69   : > { %269 = vst [vmem:[#allocation2 + $0x20] sm:$0xff] %v3123_v0 }
  0x6a   : > { %270 = vst [vmem:[#allocation2 + $0x3c8] sm:$0xff] %v3123_v0 }
  0x6b   : > { %271 = vst [vmem:[#allocation2 + $0x280] sm:$0xff] %v3123_v0 }
  0x6c   : > { %272 = vst [vmem:[#allocation2 + $0x3b8] sm:$0xff] %v3123_v0 }
  0x6d   : > { %273 = vst [vmem:[#allocation2 + $0x8] sm:$0xff] %v3123_v0 }
  0x6e   : > { %274 = vst [vmem:[#allocation2 + $0x48] sm:$0xff] %v3123_v0 }
  0x6f   : > { %275 = vst [vmem:[#allocation2 + $0x300] sm:$0xff] %v3123_v0 }
  0x70   : > { %276 = vst [vmem:[#allocation2 + $0x4a8] sm:$0xff] %v3123_v0 }
  0x71   : > { %277 = vst [vmem:[#allocation2 + $0x218] sm:$0xff] %v3123_v0 }
  0x72   : > { %278 = vst [vmem:[#allocation2 + $0x168] sm:$0xff] %v3123_v0 }
  0x73   : > { %279 = vst [vmem:[#allocation2 + $0x1f0] sm:$0xff] %v3123_v0 }
  0x74   : > { %280 = vst [vmem:[#allocation2 + $0x10] sm:$0xff] %v3123_v0 }
  0x75   : > { %281 = vst [vmem:[#allocation2 + $0x1f8] sm:$0xff] %v3123_v0 }
  0x76   : > { %282 = vst [vmem:[#allocation2 + $0x2e8] sm:$0xff] %v3123_v0 }
  0x77   : > { %283 = vst [vmem:[#allocation2 + $0x258] sm:$0xff] %v3123_v0 }
  0x78   : > { %284 = vst [vmem:[#allocation2 + $0x260] sm:$0xff] %v3123_v0 }
  0x79   : > { %285 = vst [vmem:[#allocation2 + $0x2c0] sm:$0xff] %v3123_v0 }
  0x7a   : > { %286 = vst [vmem:[#allocation2 + $0x140] sm:$0xff] %v3123_v0 }
  0x7b   : > { %287 = vst [vmem:[#allocation2 + $0xf8] sm:$0xff] %v3123_v0 }
  0x7c   : > { %288 = vst [vmem:[#allocation2 + $0x70] sm:$0xff] %v3123_v0 }
  0x7d   : > { %289 = vst [vmem:[#allocation2 + $0x4c0] sm:$0xff] %v3123_v0 }
  0x7e   : > { %290 = vst [vmem:[#allocation2 + $0x40] sm:$0xff] %v3123_v0 }
  0x7f   : > { %291 = vst [vmem:[#allocation2 + $0x350] sm:$0xff] %v3123_v0 }
  0x80   : > { %292 = vst [vmem:[#allocation2 + $0x250] sm:$0xff] %v3123_v0 }
  0x81   : > { %293 = vst [vmem:[#allocation2 + $0x1e0] sm:$0xff] %v3123_v0 }
  0x82   : > { %294 = vst [vmem:[#allocation2 + $0x318] sm:$0xff] %v3123_v0 }
  0x83   : > { %295 = vst [vmem:[#allocation2 + $0x3a0] sm:$0xff] %v3123_v0 }
  0x84   : > { %296 = vst [vmem:[#allocation2 + $0x80] sm:$0xff] %v3123_v0 }
  0x85   : > { %297 = vst [vmem:[#allocation2 + $0x400] sm:$0xff] %v3123_v0 }
  0x86   : > { %298 = vst [vmem:[#allocation2 + $0x228] sm:$0xff] %v3123_v0 }
  0x87   : > { %299 = vst [vmem:[#allocation2 + $0x348] sm:$0xff] %v3123_v0 }
  0x88   : > { %300 = vst [vmem:[#allocation2 + $0x288] sm:$0xff] %v3123_v0 }
  0x89   : > { %301 = vst [vmem:[#allocation2 + $0x460] sm:$0xff] %v3123_v0 }
  0x8a   : > { %302 = vst [vmem:[#allocation2 + $0x4b0] sm:$0xff] %v3123_v0 }
  0x8b   : > { %303 = vst [vmem:[#allocation2 + $0x1d8] sm:$0xff] %v3123_v0 }
  0x8c   : > { %304 = vst [vmem:[#allocation2 + $0x200] sm:$0xff] %v3123_v0 }
  0x8d   : > { %305 = vst [vmem:[#allocation2 + $0x50] sm:$0xff] %v3123_v0 }
  0x8e   : > { %306 = vst [vmem:[#allocation2 + $0x1b0] sm:$0xff] %v3123_v0 }
  0x8f   : > { %307 = vst [vmem:[#allocation2 + $0x150] sm:$0xff] %v3123_v0 }
  0x90   : > { %308 = vst [vmem:[#allocation2 + $0x4e8] sm:$0xff] %v3123_v0 }
  0x91   : > { %309 = vst [vmem:[#allocation2 + $0x190] sm:$0xff] %v3123_v0 }
  0x92   : > { %310 = vst [vmem:[#allocation2 + $0x418] sm:$0xff] %v3123_v0 }
  0x93   : > { %311 = vst [vmem:[#allocation2 + $0x338] sm:$0xff] %v3123_v0 }
  0x94   : > { %312 = vst [vmem:[#allocation2 + $0x358] sm:$0xff] %v3123_v0 }
  0x95   : > { %313 = vst [vmem:[#allocation2 + $0x158] sm:$0xff] %v3123_v0 }
  0x96   : > { %314 = vst [vmem:[#allocation2 + $0x88] sm:$0xff] %v3123_v0 }
  0x97   : > { %315 = vst [vmem:[#allocation2 + $0x448] sm:$0xff] %v3123_v0 }
  0x98   : > { %316 = vst [vmem:[#allocation2] sm:$0xff] %v3123_v0 }
  0x99   : > { %317 = vst [vmem:[#allocation2 + $0x2d0] sm:$0xff] %v3123_v0 }
  0x9a   : > { %318 = vst [vmem:[#allocation2 + $0x278] sm:$0xff] %v3123_v0 }
  0x9b   : > { %319 = vst [vmem:[#allocation2 + $0x478] sm:$0xff] %v3123_v0 }
  0x9c   : > { %320 = vst [vmem:[#allocation2 + $0x90] sm:$0xff] %v3123_v0 }
  0x9d   : > { %321 = vst [vmem:[#allocation2 + $0x138] sm:$0xff] %v3123_v0 }
  0x9e   : > { %322 = vst [vmem:[#allocation2 + $0x438] sm:$0xff] %v3123_v0 }
  0x9f   : > { %323 = vst [vmem:[#allocation2 + $0x2c8] sm:$0xff] %v3123_v0 }
  0xa0   : > { %324 = vst [vmem:[#allocation2 + $0x3e0] sm:$0xff] %v3123_v0 }
  0xa1   : > { %325 = vst [vmem:[#allocation2 + $0x130] sm:$0xff] %v3123_v0 }
  0xa2   : > { %326 = vst [vmem:[#allocation2 + $0x298] sm:$0xff] %v3123_v0 }
  0xa3   : > { %327 = vst [vmem:[#allocation2 + $0x2f8] sm:$0xff] %v3123_v0 }
  0xa4   : > { %328 = vst [vmem:[#allocation2 + $0x68] sm:$0xff] %v3123_v0 }
  0xa5   : > { %329 = vst [vmem:[#allocation2 + $0x3c0] sm:$0xff] %v3123_v0 }
  0xa6   : > { %330 = vst [vmem:[#allocation2 + $0x368] sm:$0xff] %v3123_v0 }
  0xa7   : > { %331 = vst [vmem:[#allocation2 + $0x2e0] sm:$0xff] %v3123_v0 }
  0xa8   : > { %332 = vst [vmem:[#allocation2 + $0x3a8] sm:$0xff] %v3123_v0 }
  0xa9   : > { %333 = vst [vmem:[#allocation2 + $0x1c8] sm:$0xff] %v3123_v0 }
  0xaa   : > { %334 = vst [vmem:[#allocation2 + $0x3d8] sm:$0xff] %v3123_v0 }
  0xab   : > { %335 = vst [vmem:[#allocation2 + $0x408] sm:$0xff] %v3123_v0 }
  0xac   : > { %336 = vst [vmem:[#allocation2 + $0xe8] sm:$0xff] %v3123_v0 }
  0xad   : > { %337 = vst [vmem:[#allocation2 + $0x98] sm:$0xff] %v3123_v0 }
  0xae   : > { %338 = vst [vmem:[#allocation2 + $0x410] sm:$0xff] %v3123_v0 }
  0xaf   : > { %339 = vst [vmem:[#allocation2 + $0xc8] sm:$0xff] %v3123_v0 }
  0xb0   : > { %340 = vst [vmem:[#allocation2 + $0x420] sm:$0xff] %v3123_v0 }
  0xb1   : > { %341 = vst [vmem:[#allocation2 + $0x28] sm:$0xff] %v3123_v0 }
  0xb2   : > { %342 = vst [vmem:[#allocation2 + $0x290] sm:$0xff] %v3123_v0 }
  0xb3   : > { %343 = vst [vmem:[#allocation2 + $0x330] sm:$0xff] %v3123_v0 }
  0xb4   : > { %344 = vst [vmem:[#allocation2 + $0x118] sm:$0xff] %v3123_v0 }
  0xb5   : > { %345 = vst [vmem:[#allocation2 + $0x490] sm:$0xff] %v3123_v0 }
  0xb6   : > { %346 = vst [vmem:[#allocation2 + $0x4c8] sm:$0xff] %v3123_v0 }
  0xb7   : > { %347 = vst [vmem:[#allocation2 + $0x120] sm:$0xff] %v3123_v0 }
  0xb8   : > { %348 = vst [vmem:[#allocation2 + $0x1d0] sm:$0xff] %v3123_v0 }
  0xb9   : > { %349 = vst [vmem:[#allocation2 + $0x208] sm:$0xff] %v3123_v0 }
  0xba   : > { %350 = vst [vmem:[#allocation2 + $0xa8] sm:$0xff] %v3123_v0 }
  0xbb   : > { %351 = vst [vmem:[#allocation2 + $0x428] sm:$0xff] %v3123_v0 }
  0xbc   : > { %352 = vst [vmem:[#allocation2 + $0x268] sm:$0xff] %v3123_v0 }
  0xbd   : > { %353 = vst [vmem:[#allocation2 + $0x180] sm:$0xff] %v3123_v0 }
  0xbe   : > { %354 = vst [vmem:[#allocation2 + $0x4b8] sm:$0xff] %v3123_v0 }
  0xbf   : > { %355 = vst [vmem:[#allocation2 + $0x178] sm:$0xff] %v3123_v0 }
  0xc0   : > { %356 = vst [vmem:[#allocation2 + $0x1e8] sm:$0xff] %v3123_v0 }
  0xc1   : > { %357 = vst [vmem:[#allocation2 + $0x2f0] sm:$0xff] %v3123_v0 }
  0xc2   : > { %358 = vst [vmem:[#allocation2 + $0x3f0] sm:$0xff] %v3123_v0 }
  0xc3   : > { %359 = vst [vmem:[#allocation2 + $0x170] sm:$0xff] %v3123_v0 }
  0xc4   : > { %360 = vst [vmem:[#allocation2 + $0x198] sm:$0xff] %v3123_v0 }
  0xc5   : > { %361 = vst [vmem:[#allocation2 + $0x1b8] sm:$0xff] %v3123_v0 }
  0xc6   : > { %362 = vst [vmem:[#allocation2 + $0xf0] sm:$0xff] %v3123_v0 }
  0xc7   : > { %363 = vst [vmem:[#allocation2 + $0x238] sm:$0xff] %v3123_v0 }
  0xc8   : > { %364 = vst [vmem:[#allocation2 + $0x248] sm:$0xff] %v3123_v0 }
  0xc9   : > { %365 = vst [vmem:[#allocation2 + $0x4d0] sm:$0xff] %v3123_v0 }
  0xca   : > { %366 = vst [vmem:[#allocation2 + $0x498] sm:$0xff] %v3123_v0 }
  0xcb   : > { %367 = vst [vmem:[#allocation2 + $0x240] sm:$0xff] %v3123_v0 }
  0xcc   : > { %368 = vst [vmem:[#allocation2 + $0x100] sm:$0xff] %v3123_v0 }
  0xcd   : > { %369 = vst [vmem:[#allocation2 + $0x2d8] sm:$0xff] %v3123_v0 }
  0xce   : > { %370 = vst [vmem:[#allocation2 + $0x4e0] sm:$0xff] %v3123_v0 }
  0xcf   : > { %371 = vst [vmem:[#allocation2 + $0x30] sm:$0xff] %v3123_v0 }
  0xd0   : > { %372 = vst [vmem:[#allocation2 + $0x2b8] sm:$0xff] %v3123_v0 }
  0xd1   : > { %373 = vst [vmem:[#allocation2 + $0x1c0] sm:$0xff] %v3123_v0 }
  0xd2   : > { %374 = vst [vmem:[#allocation2 + $0x468] sm:$0xff] %v3123_v0 }
  0xd3   : > { %375 = vst [vmem:[#allocation2 + $0xe0] sm:$0xff] %v3123_v0 }
  0xd4   : > { %376 = vst [vmem:[#allocation2 + $0x58] sm:$0xff] %v3123_v0 }
  0xd5   : > { %377 = vst [vmem:[#allocation2 + $0x3d0] sm:$0xff] %v3123_v0 }
  0xd6   : > { %378 = vst [vmem:[#allocation2 + $0x340] sm:$0xff] %v3123_v0 }
  0xd7   : > { %379 = vst [vmem:[#allocation2 + $0x3e8] sm:$0xff] %v3123_v0 }
  0xd8   : > { %380 = vst [vmem:[#allocation2 + $0x128] sm:$0xff] %v3123_v0 }
  0xd9   : > { %381 = vst [vmem:[#allocation2 + $0x470] sm:$0xff] %v3123_v0 }
  0xda   : > { %382 = vst [vmem:[#allocation2 + $0x148] sm:$0xff] %v3123_v0 }
  0xdb   : > { %383 = vst [vmem:[#allocation2 + $0xd0] sm:$0xff] %v3123_v0 }
  0xdc   : > { %384 = vst [vmem:[#allocation2 + $0x230] sm:$0xff] %v3123_v0 }
  0xdd   : > { %385 = vst [vmem:[#allocation2 + $0x430] sm:$0xff] %v3123_v0 }
  0xde   : > { %386 = vst [vmem:[#allocation2 + $0x370] sm:$0xff] %v3123_v0 }
  0xdf   : > { %387 = vst [vmem:[#allocation2 + $0xc0] sm:$0xff] %v3123_v0 }
  0xe0   : > { %388 = vst [vmem:[#allocation2 + $0x110] sm:$0xff] %v3123_v0 }
  0xe1   : > { %389 = vst [vmem:[#allocation2 + $0x1a0] sm:$0xff] %v3123_v0 }
  0xe2 PF: > { %v2677_v1 = vld [vmem:[%s3300_s10 + $0x118] sm:$0xf]  ;;  %v2753_v2 = vld [vmem:[%s3300_s10 + $0x128] sm:$0xf0]  ;;  %v2657_v3 = vld [vmem:[%s3300_s10 + $0xf0] sm:$0xf] }
  0xe3   : > { %v2678_v4 = vor.u32 %v2753_v2, %v2677_v1  ;;  %v2748_v5 = vld [vmem:[%s3300_s10 + $0x100] sm:$0xf0]  ;;  %v2637_v7 = vld [vmem:[%s3300_s10 + $0xc8] sm:$0xf]  ;;  %v2743_v8 = vld [vmem:[%s3300_s10 + $0xd8] sm:$0xf0] }
  0xe4   : > { %v2658_v6 = vor.u32 %v2748_v5, %v2657_v3  ;;  %v2638_v9 = vor.u32 %v2743_v8, %v2637_v7  ;;  %v2617_v10 = vld [vmem:[%s3300_s10 + $0xa0] sm:$0xf]  ;;  %v2738_v11 = vld [vmem:[%s3300_s10 + $0xb0] sm:$0xf0]  ;;  %v2597_v13 = vld [vmem:[%s3300_s10 + $0x78] sm:$0xf] }
  0xe5   : > { %937 = vmatpush.bf16.msra.mxu0 %v2678_v4  ;;  %2756 = vmatpush.bf16.msra.mxu1 %v2678_v4  ;;  %v2618_v12 = vor.u32 %v2738_v11, %v2617_v10  ;;  %v2733_v14 = vld [vmem:[%s3300_s10 + $0x88] sm:$0xf0]  ;;  %v2577_v16 = vld [vmem:[%s3300_s10 + $0x50] sm:$0xf]  ;;  %v2728_v17 = vld [vmem:[%s3300_s10 + $0x60] sm:$0xf0] }
  0xe6   : > { %2757 = vmatpush.bf16.msra.mxu2 %v2678_v4  ;;  %2758 = vmatpush.bf16.msra.mxu3 %v2678_v4  ;;  %v2598_v15 = vor.u32 %v2733_v14, %v2597_v13  ;;  %v2578_v18 = vor.u32 %v2728_v17, %v2577_v16  ;;  %v2557_v19 = vld [vmem:[%s3300_s10 + $0x28] sm:$0xf]  ;;  %v2723_v20 = vld [vmem:[%s3300_s10 + $0x38] sm:$0xf0]  ;;  %s2699_s19 = sshll.u32 %s3100_s18, 7  ;;  %p2695_p1 = scmp.ne.s32.totalorder %s3100_s18, 1 }
  0xe7   : > { %v2558_v21 = vor.u32 %v2723_v20, %v2557_v19  ;;  %v2537_v22 = vld [vmem:[%s3300_s10] sm:$0xf]  ;;  %v2718_v23 = vld [vmem:[%s3300_s10 + $0x10] sm:$0xf0]  ;;  %v2752_v26 = vld [vmem:[%s3300_s10 + $0x124] sm:$0xf] }
  0xe8   : > { %v2685_v24 = vld [vmem:[%s3300_s10 + $0x120] sm:$0xf]  ;;  %v2754_v25 = vld [vmem:[%s3300_s10 + $0x130] sm:$0xf0]  ;;  %v2687_v27 = vld [vmem:[%s3300_s10 + $0x134] sm:$0xf0]  ;;  %v2538_v28 = vor.u32 %v2718_v23, %v2537_v22 }
  0xe9   : > { %938 = vmatpush.bf16.msra.mxu0 %v2658_v6  ;;  %2759 = vmatpush.bf16.msra.mxu1 %v2658_v6  ;;  %s3497_s25 = scalar_lea.vmem [#allocation6], %s2699_s19  ;;  %v2751_v31 = vld [vmem:[%s3300_s10 + $0x11c] sm:$0xf]  ;;  %v2679_v32 = vld [vmem:[%s3300_s10 + $0x12c] sm:$0xf0]  ;;  %v2686_v33 = vor.u32 %v2754_v25, %v2685_v24  ;;  %v2690_v34 = vor.u32 %v2752_v26, %v2687_v27  ;;  %s3813_s29 = sld [smem:[#allocation19_spill]] (!%p2695_p1) }
  0xea   : > { %2760 = vmatpush.bf16.msra.mxu2 %v2658_v6  ;;  %2761 = vmatpush.bf16.msra.mxu3 %v2658_v6  ;;  %v3500_v29 = vld [vmem:[%s3497_s25] sm:$0xff]  ;;  %v2693_v35 = vld [vmem:[%s3300_s10 + $0x128] sm:$0xf]  ;;  %v2755_v36 = vld [vmem:[%s3300_s10 + $0x138] sm:$0xf0]  ;;  %v2682_v43 = vor.u32 %v2751_v31, %v2679_v32  ;;  %s3124_s11 = smov (!%p2695_p1), 124  }
  0xeb   : > { %v3503_v30 = vld [vmem:[%s3497_s25 + $0x20] sm:$0xff]  ;;  %v2665_v37 = vld [vmem:[%s3300_s10 + $0xf8] sm:$0xf]  ;;  %v2749_v38 = vld [vmem:[%s3300_s10 + $0x108] sm:$0xf0]  ;;  %v2694_v44 = vor.u32 %v2755_v36, %v2693_v35  ;;  %s3126_s4 = smov (!%p2695_p1), 120  }
  0xec   : > { %v2747_v39 = vld [vmem:[%s3300_s10 + $0xfc] sm:$0xf]  ;;  %v2667_v40 = vld [vmem:[%s3300_s10 + $0x10c] sm:$0xf0]  ;;  %v3514_v41 = vld [vmem:[%s3497_s25 + $0x40] sm:$0xff]  ;;  %v2666_v47 = vor.u32 %v2749_v38, %v2665_v37  ;;  %s3127_s18 = smov (!%p2695_p1), 78  }
  0xed   : > { %939 = vmatpush.bf16.msra.mxu0 %v2638_v9  ;;  %2762 = vmatpush.bf16.msra.mxu1 %v2638_v9  ;;  %v3517_v42 = vld [vmem:[%s3497_s25 + $0x60] sm:$0xff]  ;;  %v2746_v45 = vld [vmem:[%s3300_s10 + $0xf4] sm:$0xf]  ;;  %v2659_v46 = vld [vmem:[%s3300_s10 + $0x104] sm:$0xf0]  ;;  %v2670_v48 = vor.u32 %v2747_v39, %v2667_v40  ;;  %s3128_s5 = smov (!%p2695_p1), 76  }
  0xee   : > { %2763 = vmatpush.bf16.msra.mxu2 %v2638_v9  ;;  %2764 = vmatpush.bf16.msra.mxu3 %v2638_v9  ;;  %v2673_v49 = vld [vmem:[%s3300_s10 + $0x100] sm:$0xf]  ;;  %v2750_v50 = vld [vmem:[%s3300_s10 + $0x110] sm:$0xf0]  ;;  %v2645_v51 = vld [vmem:[%s3300_s10 + $0xd0] sm:$0xf]  ;;  %v2662_v55 = vor.u32 %v2746_v45, %v2659_v46 }
  0xef   : > { %v2744_v52 = vld [vmem:[%s3300_s10 + $0xe0] sm:$0xf0]  ;;  %v2742_v53 = vld [vmem:[%s3300_s10 + $0xd4] sm:$0xf]  ;;  %v2647_v54 = vld [vmem:[%s3300_s10 + $0xe4] sm:$0xf0]  ;;  %v2674_v56 = vor.u32 %v2750_v50, %v2673_v49 }
  0xf0   : > { %v2741_v57 = vld [vmem:[%s3300_s10 + $0xcc] sm:$0xf]  ;;  %v2639_v58 = vld [vmem:[%s3300_s10 + $0xdc] sm:$0xf0]  ;;  %v2646_v59 = vor.u32 %v2744_v52, %v2645_v51  ;;  %v2650_v60 = vor.u32 %v2742_v53, %v2647_v54  ;;  %v2653_v61 = vld [vmem:[%s3300_s10 + $0xd8] sm:$0xf] }
  0xf1   : > { %940 = vmatpush.bf16.msra.mxu0 %v2618_v12  ;;  %2765 = vmatpush.bf16.msra.mxu1 %v2618_v12  ;;  %v2745_v62 = vld [vmem:[%s3300_s10 + $0xe8] sm:$0xf0]  ;;  %v2625_v63 = vld [vmem:[%s3300_s10 + $0xa8] sm:$0xf]  ;;  %v2739_v0 = vld [vmem:[%s3300_s10 + $0xb8] sm:$0xf0]  ;;  %v2642_v3 = vor.u32 %v2741_v57, %v2639_v58 }
  0xf2   : > { %2766 = vmatpush.bf16.msra.mxu2 %v2618_v12  ;;  %2767 = vmatpush.bf16.msra.mxu3 %v2618_v12  ;;  %v2737_v1 = vld [vmem:[%s3300_s10 + $0xac] sm:$0xf]  ;;  %v2627_v2 = vld [vmem:[%s3300_s10 + $0xbc] sm:$0xf0]  ;;  %v2654_v4 = vor.u32 %v2745_v62, %v2653_v61  ;;  %v2736_v5 = vld [vmem:[%s3300_s10 + $0xa4] sm:$0xf]  ;;  %v2626_v7 = vor.u32 %v2739_v0, %v2625_v63 }
  0xf3   : > { %v2619_v6 = vld [vmem:[%s3300_s10 + $0xb4] sm:$0xf0]  ;;  %v2630_v8 = vor.u32 %v2737_v1, %v2627_v2  ;;  %v2633_v9 = vld [vmem:[%s3300_s10 + $0xb0] sm:$0xf]  ;;  %v2740_v10 = vld [vmem:[%s3300_s10 + $0xc0] sm:$0xf0] }
  0xf4   : > { %v2605_v11 = vld [vmem:[%s3300_s10 + $0x80] sm:$0xf]  ;;  %v2734_v12 = vld [vmem:[%s3300_s10 + $0x90] sm:$0xf0]  ;;  %v2732_v13 = vld [vmem:[%s3300_s10 + $0x84] sm:$0xf]  ;;  %v2622_v17 = vor.u32 %v2736_v5, %v2619_v6 }
  0xf5   : > { %941 = vmatpush.bf16.msra.mxu0 %v2598_v15  ;;  %2768 = vmatpush.bf16.msra.mxu1 %v2598_v15  ;;  %v2607_v14 = vld [vmem:[%s3300_s10 + $0x94] sm:$0xf0]  ;;  %v3551_v16 = vld [vmem:[%s3497_s25 + $0x28] sm:$0xff]  ;;  %v2731_v19 = vld [vmem:[%s3300_s10 + $0x7c] sm:$0xf]  ;;  %s3129_s7 = smov (!%p2695_p1), 74  }
  0xf6   : > { %2769 = vmatpush.bf16.msra.mxu2 %v2598_v15  ;;  %2770 = vmatpush.bf16.msra.mxu3 %v2598_v15  ;;  %v3548_v15 = vld [vmem:[%s3497_s25 + $0x8] sm:$0xff]  ;;  %v2599_v20 = vld [vmem:[%s3300_s10 + $0x8c] sm:$0xf0]  ;;  %v2610_v22 = vor.u32 %v2732_v13, %v2607_v14  ;;  %v2735_v24 = vld [vmem:[%s3300_s10 + $0x98] sm:$0xf0]  ;;  %s3130_s23 = smov (!%p2695_p1), 53  }
  0xf7   : > { %v2613_v23 = vld [vmem:[%s3300_s10 + $0x88] sm:$0xf]  ;;  %v2585_v25 = vld [vmem:[%s3300_s10 + $0x58] sm:$0xf]  ;;  %v2729_v26 = vld [vmem:[%s3300_s10 + $0x68] sm:$0xf0] }
  0xf8   : > { %v2727_v27 = vld [vmem:[%s3300_s10 + $0x5c] sm:$0xf]  ;;  %v3562_v31 = vld [vmem:[%s3497_s25 + $0x48] sm:$0xff]  ;;  %v2726_v35 = vld [vmem:[%s3300_s10 + $0x54] sm:$0xf]  ;;  %v2586_v36 = vor.u32 %v2729_v26, %v2585_v25  ;;  %s3131_s6 = smov (!%p2695_p1), 52  }
  0xf9   : > { %942 = vmatpush.bf16.msra.mxu0 %v2578_v18  ;;  %2771 = vmatpush.bf16.msra.mxu1 %v2578_v18  ;;  %v3565_v32 = vld [vmem:[%s3497_s25 + $0x68] sm:$0xff]  ;;  %v2593_v39 = vld [vmem:[%s3300_s10 + $0x60] sm:$0xf]  ;;  %v2730_v40 = vld [vmem:[%s3300_s10 + $0x70] sm:$0xf0]  ;;  %s3132_s30 = smov (!%p2695_p1), 51  }
  0xfa   : > { %2772 = vmatpush.bf16.msra.mxu2 %v2578_v18  ;;  %2773 = vmatpush.bf16.msra.mxu3 %v2578_v18  ;;  %v2634_v18 = vor.u32 %v2740_v10, %v2633_v9  ;;  %v2579_v38 = vld [vmem:[%s3300_s10 + $0x64] sm:$0xf0]  ;;  %v2722_v45 = vld [vmem:[%s3300_s10 + $0x34] sm:$0xf]  ;;  %v2721_v49 = vld [vmem:[%s3300_s10 + $0x2c] sm:$0xf] }
  0xfb   : > { %v2582_v46 = vor.u32 %v2726_v35, %v2579_v38  ;;  %v2559_v50 = vld [vmem:[%s3300_s10 + $0x3c] sm:$0xf0]  ;;  %v2573_v53 = vld [vmem:[%s3300_s10 + $0x38] sm:$0xf]  ;;  %v2725_v54 = vld [vmem:[%s3300_s10 + $0x48] sm:$0xf0] }
  0xfc   : > { %v2717_v57 = vld [vmem:[%s3300_s10 + $0xc] sm:$0xf]  ;;  %v2547_v58 = vld [vmem:[%s3300_s10 + $0x1c] sm:$0xf0]  ;;  %v2716_v61 = vld [vmem:[%s3300_s10 + $0x4] sm:$0xf] }
  0xfd   : > { %943 = vmatpush.bf16.msra.mxu0 %v2558_v21  ;;  %2774 = vmatpush.bf16.msra.mxu1 %v2558_v21  ;;  %v2550_v63 = vor.u32 %v2717_v57, %v2547_v58  ;;  %v2539_v0 = vld [vmem:[%s3300_s10 + $0x14] sm:$0xf0]  ;;  %v2553_v1 = vld [vmem:[%s3300_s10 + $0x10] sm:$0xf]  ;;  %v2720_v2 = vld [vmem:[%s3300_s10 + $0x20] sm:$0xf0] }
  0xfe   : > { %2775 = vmatpush.bf16.msra.mxu2 %v2558_v21  ;;  %2776 = vmatpush.bf16.msra.mxu3 %v2558_v21  ;;  %v2606_v21 = vor.u32 %v2734_v12, %v2605_v11  ;;  %v2702_v5 = vld [vmem:[%s3497_s25 + $0x10] sm:$0xff]  ;;  %v2703_v9 = vld [vmem:[%s3497_s25 + $0x18] sm:$0xff]  ;;  %v430_v14 = vld [vmem:[#allocation2 + $0x3c8] sm:$0xff]  ;;  %s3133_s8 = smov (!%p2695_p1), 32   ;;  %s3134_s28 = smov (!%p2695_p1), 30  }
  0xff   : > { %v3593_v6 = vld [vmem:[%s3497_s25 + $0x30] sm:$0xff]  ;;  %v3606_v10 = vld [vmem:[%s3497_s25 + $0x38] sm:$0xff]  ;;  %v475_v35 = vld [vmem:[#allocation2 + $0x448] sm:$0xff]  ;;  %s3135_s15 = smov (!%p2695_p1), 29   ;;  %s3136_s24 = smov (!%p2695_p1), 28  }
 0x100   : > { %v3609_v11 = vld [vmem:[%s3497_s25 + $0x58] sm:$0xff]  ;;  %v390_v13 = vld [vmem:[#allocation2 + $0x2b0] sm:$0xff]  ;;  %s3138_s3 = smov (!%p2695_p1), 26   ;;  %s3139_s19 = smov (!%p2695_p1), 24  }
 0x101   : > { %944 = vmatpush.bf16.msra.mxu0 %v2538_v28  ;;  %2777 = vmatpush.bf16.msra.mxu1 %v2538_v28  ;;  %v3612_v12 = vld [vmem:[%s3497_s25 + $0x78] sm:$0xff]  ;;  %s3141_s26 = smov (!%p2695_p1), 4   ;;  %s3142_s27 = smov (!%p2695_p1), 3  }
 0x102   : > { %2778 = vmatpush.bf16.msra.mxu2 %v2538_v28  ;;  %2779 = vmatpush.bf16.msra.mxu3 %v2538_v28  ;;  %v2587_v28 = vld [vmem:[%s3300_s10 + $0x6c] sm:$0xf0] }
 0x103   : > { %v2590_v37 = vor.u32 %v2727_v27, %v2587_v28 }
 0x104   : > { %945 = vmatmul.bf16.vlgmr.msra.gmra.mxu0 %v3500_v29  ;;  %965 = vmatmul.bf16.vlgmr.msra.gmra.mxu1 %v3503_v30 }
 0x105   : > { %985 = vmatmul.bf16.vlgmr.msra.gmra.mxu2 %v3514_v41  ;;  %1005 = vmatmul.bf16.vlgmr.msra.gmra.mxu3 %v3517_v42 }
 0x106   : > { %1115 = vmatpush.bf16.msrb.mxu2 %v2686_v33  ;;  %1204 = vmatpush.bf16.msrb.mxu3 %v2690_v34  ;;  %v2602_v33 = vor.u32 %v2731_v19, %v2599_v20  ;;  %v2614_v34 = vor.u32 %v2735_v24, %v2613_v23  ;;  %v510_v20 = vld [vmem:[#allocation2 + $0xa8] sm:$0xff] }
 0x107   : > { %1026 = vmatpush.bf16.msrb.mxu1 %v2682_v43  ;;  %1293 = vmatpush.bf16.msrb.mxu0 %v2694_v44  ;;  %v2565_v43 = vld [vmem:[%s3300_s10 + $0x30] sm:$0xf]  ;;  %v2724_v44 = vld [vmem:[%s3300_s10 + $0x40] sm:$0xf0] }
 0x108   : > { %v2566_v51 = vor.u32 %v2724_v44, %v2565_v43 }
 0x10a   : > { %1116 = vmatpush.bf16.msrb.mxu2 %v2666_v47  ;;  %1205 = vmatpush.bf16.msrb.mxu3 %v2670_v48  ;;  %v2594_v47 = vor.u32 %v2730_v40, %v2593_v39  ;;  %v2567_v48 = vld [vmem:[%s3300_s10 + $0x44] sm:$0xf0] }
 0x10b   : > { %1027 = vmatpush.bf16.msrb.mxu1 %v2662_v55  ;;  %1294 = vmatpush.bf16.msrb.mxu0 %v2674_v56  ;;  %v2570_v52 = vor.u32 %v2722_v45, %v2567_v48  ;;  %v2545_v55 = vld [vmem:[%s3300_s10 + $0x8] sm:$0xf]  ;;  %v2719_v56 = vld [vmem:[%s3300_s10 + $0x18] sm:$0xf0]  ;;  %v480_v48 = vld [vmem:[#allocation2 + $0x90] sm:$0xff]  ;;  %s3137_s10 = smov (!%p2695_p1), 27  }
 0x10c   : > { %v2546_v62 = vor.u32 %v2719_v56, %v2545_v55 }
 0x10e   : > { %1117 = vmatpush.bf16.msrb.mxu2 %v2646_v59  ;;  %1206 = vmatpush.bf16.msrb.mxu3 %v2650_v60  ;;  %v2562_v59 = vor.u32 %v2721_v49, %v2559_v50  ;;  %v2574_v60 = vor.u32 %v2725_v54, %v2573_v53  ;;  %v520_v49 = vld [vmem:[#allocation2 + $0x198] sm:$0xff]  ;;  %v405_v50 = vld [vmem:[#allocation2 + $0x60] sm:$0xff] }
 0x10f   : > { %1028 = vmatpush.bf16.msrb.mxu1 %v2642_v3  ;;  %1295 = vmatpush.bf16.msrb.mxu0 %v2654_v4  ;;  %v2542_v3 = vor.u32 %v2716_v61, %v2539_v0  ;;  %v2554_v4 = vor.u32 %v2720_v2, %v2553_v1  ;;  %v525_v61 = vld [vmem:[#allocation2 + $0x4d0] sm:$0xff] }
 0x112   : > { %1118 = vmatpush.bf16.msrb.mxu2 %v2626_v7  ;;  %1207 = vmatpush.bf16.msrb.mxu3 %v2630_v8  ;;  %v3596_v7 = vld [vmem:[%s3497_s25 + $0x50] sm:$0xff] }
 0x113   : > { %1029 = vmatpush.bf16.msrb.mxu1 %v2622_v17  ;;  %1296 = vmatpush.bf16.msrb.mxu0 %v2634_v18  ;;  %v3599_v8 = vld [vmem:[%s3497_s25 + $0x70] sm:$0xff]  ;;  %s3140_s25 = smov (!%p2695_p1), 5  }
 0x114   : > { %950 = vmatmul.bf16.gmra.mxu0 %v3548_v15  ;;  %970 = vmatmul.bf16.gmra.mxu1 %v3551_v16 }
 0x115   : > { %990 = vmatmul.bf16.gmra.mxu2 %v3562_v31  ;;  %1010 = vmatmul.bf16.gmra.mxu3 %v3565_v32 }
 0x116   : > { %1119 = vmatpush.bf16.msrb.mxu2 %v2606_v21  ;;  %1208 = vmatpush.bf16.msrb.mxu3 %v2610_v22  ;;  %v395_v21 = vld [vmem:[#allocation2 + $0x328] sm:$0xff]  ;;  %v435_v22 = vld [vmem:[#allocation2 + $0x300] sm:$0xff] }
 0x117   : > { %1030 = vmatpush.bf16.msrb.mxu1 %v2602_v33  ;;  %1297 = vmatpush.bf16.msrb.mxu0 %v2614_v34 }
 0x11a   : > { %1120 = vmatpush.bf16.msrb.mxu2 %v2586_v36  ;;  %1209 = vmatpush.bf16.msrb.mxu3 %v2590_v37  ;;  %v515_v36 = vld [vmem:[#allocation2 + $0x178] sm:$0xff]  ;;  %v400_v37 = vld [vmem:[#allocation2 + $0x310] sm:$0xff] }
 0x11b   : > { %1031 = vmatpush.bf16.msrb.mxu1 %v2582_v46  ;;  %1298 = vmatpush.bf16.msrb.mxu0 %v2594_v47 }
 0x11e   : > { %1121 = vmatpush.bf16.msrb.mxu2 %v2566_v51  ;;  %1210 = vmatpush.bf16.msrb.mxu3 %v2570_v52  ;;  %v445_v51 = vld [vmem:[#allocation2 + $0x2c0] sm:$0xff] }
 0x11f   : > { %1032 = vmatpush.bf16.msrb.mxu1 %v2562_v59  ;;  %1299 = vmatpush.bf16.msrb.mxu0 %v2574_v60  ;;  %v485_v60 = vld [vmem:[#allocation2 + $0x130] sm:$0xff] }
 0x122   : > { %1122 = vmatpush.bf16.msrb.mxu2 %v2546_v62  ;;  %1211 = vmatpush.bf16.msrb.mxu3 %v2550_v63  ;;  %v450_v62 = vld [vmem:[#allocation2 + $0x40] sm:$0xff] }
 0x123   : > { %1033 = vmatpush.bf16.msrb.mxu1 %v2542_v3  ;;  %1300 = vmatpush.bf16.msrb.mxu0 %v2554_v4 }
 0x124   : > { %955 = vmatmul.bf16.gmra.mxu0 %v2702_v5  ;;  %975 = vmatmul.bf16.gmra.mxu1 %v3593_v6 }
 0x125   : > { %995 = vmatmul.bf16.gmra.mxu2 %v3596_v7  ;;  %1015 = vmatmul.bf16.gmra.mxu3 %v3599_v8 }
 0x134   : > { %960 = vmatmul.bf16.gmra.mxu0 %v2703_v9  ;;  %980 = vmatmul.bf16.gmra.mxu1 %v3606_v10 }
 0x135   : > { %1000 = vmatmul.bf16.gmra.mxu2 %v3609_v11  ;;  %1020 = vmatmul.bf16.gmra.mxu3 %v3612_v12 }
 0x144   : > { %1034 = vmatmul.bf16.vlgmr.msrb.gmra.mxu1 %v3500_v29  ;;  %1301 = vmatmul.bf16.vlgmr.msrb.gmra.mxu0 %v3500_v29 }
 0x145   : > { %1123 = vmatmul.bf16.vlgmr.msrb.gmra.mxu2 %v3500_v29  ;;  %1212 = vmatmul.bf16.vlgmr.msrb.gmra.mxu3 %v3500_v29 }
 0x154   : > { %1039 = vmatmul.bf16.gmra.mxu1 %v3548_v15  ;;  %1306 = vmatmul.bf16.gmra.mxu0 %v3548_v15 }
 0x155   : > { %1128 = vmatmul.bf16.gmra.mxu2 %v3548_v15  ;;  %1217 = vmatmul.bf16.gmra.mxu3 %v3548_v15  ;;  %v470_v15 = vld [vmem:[#allocation2 + $0x418] sm:$0xff] }
 0x164   : > { %1044 = vmatmul.bf16.gmra.mxu1 %v2702_v5  ;;  %1311 = vmatmul.bf16.gmra.mxu0 %v2702_v5 }
 0x165   : > { %1133 = vmatmul.bf16.gmra.mxu2 %v2702_v5  ;;  %1222 = vmatmul.bf16.gmra.mxu3 %v2702_v5 }
 0x174   : > { %1049 = vmatmul.bf16.gmra.mxu1 %v2703_v9  ;;  %1316 = vmatmul.bf16.gmra.mxu0 %v2703_v9 }
 0x175   : > { %1138 = vmatmul.bf16.gmra.mxu2 %v2703_v9  ;;  %1227 = vmatmul.bf16.gmra.mxu3 %v2703_v9 }
 0x181   : > { %v946_v17 = vpop.f32.mrf.mxu0  ;;  %v966_v29 = vpop.f32.mrf.mxu1 }
 0x182   : > { %v1382_v18 = vadd.f32 %v946_v17, %v390_v13  ;;  %v1422_v19 = vadd.f32 %v966_v29, %v430_v14  ;;  %v490_v13 = vld [vmem:[#allocation2 + $0x368] sm:$0xff]  ;;  %v530_v14 = vld [vmem:[#allocation2 + $0x4e0] sm:$0xff] }
 0x183   : > { %v415_v17 = vld [vmem:[#allocation2 + $0x4a0] sm:$0xff] }
 0x184   : > { %1542 = vst [vmem:[#allocation2 + $0x2b0] sm:$0xff] %v1382_v18  ;;  %1054 = vmatmul.bf16.gmra.mxu1 %v3503_v30  ;;  %1321 = vmatmul.bf16.gmra.mxu0 %v3503_v30  ;;  %v455_v29 = vld [vmem:[#allocation2 + $0x3a0] sm:$0xff] }
 0x185   : > { %1582 = vst [vmem:[#allocation2 + $0x3c8] sm:$0xff] %v1422_v19  ;;  %1143 = vmatmul.bf16.gmra.mxu2 %v3503_v30  ;;  %1232 = vmatmul.bf16.gmra.mxu3 %v3503_v30  ;;  %v440_v30 = vld [vmem:[#allocation2 + $0x10] sm:$0xff] }
 0x188   : > { %v986_v23 = vpop.f32.mrf.mxu2  ;;  %v1006_v24 = vpop.f32.mrf.mxu3 }
 0x189   : > { %v1462_v25 = vadd.f32 %v986_v23, %v470_v15  ;;  %v1502_v26 = vadd.f32 %v1006_v24, %v510_v20  ;;  %v948_v27 = vpop.f32.mrf.mxu0  ;;  %v968_v28 = vpop.f32.mrf.mxu1 }
 0x18a   : > { %v1387_v33 = vadd.f32 %v948_v27, %v395_v21  ;;  %v1427_v34 = vadd.f32 %v968_v28, %v435_v22  ;;  %v460_v27 = vld [vmem:[#allocation2 + $0x288] sm:$0xff] }
 0x18b   : > { %1622 = vst [vmem:[#allocation2 + $0x418] sm:$0xff] %v1462_v25  ;;  %v495_v25 = vld [vmem:[#allocation2 + $0x408] sm:$0xff] }
 0x18c   : > { %1662 = vst [vmem:[#allocation2 + $0xa8] sm:$0xff] %v1502_v26  ;;  %v535_v26 = vld [vmem:[#allocation2 + $0xe0] sm:$0xff] }
 0x18d   : > { %1547 = vst [vmem:[#allocation2 + $0x328] sm:$0xff] %v1387_v33 }
 0x18e   : > { %1587 = vst [vmem:[#allocation2 + $0x300] sm:$0xff] %v1427_v34 }
 0x190   : > { %v988_v38 = vpop.f32.mrf.mxu2  ;;  %v1008_v39 = vpop.f32.mrf.mxu3 }
 0x191   : > { %v1467_v40 = vadd.f32 %v988_v38, %v475_v35  ;;  %v1507_v43 = vadd.f32 %v1008_v39, %v515_v36  ;;  %v951_v44 = vpop.f32.mrf.mxu0  ;;  %v971_v45 = vpop.f32.mrf.mxu1  ;;  %v500_v39 = vld [vmem:[#allocation2 + $0x420] sm:$0xff] }
 0x192   : > { %v1392_v46 = vadd.f32 %v951_v44, %v400_v37  ;;  %v1432_v47 = vadd.f32 %v971_v45, %v440_v30  ;;  %v465_v44 = vld [vmem:[#allocation2 + $0x50] sm:$0xff] }
 0x193   : > { %1627 = vst [vmem:[#allocation2 + $0x448] sm:$0xff] %v1467_v40  ;;  %v540_v40 = vld [vmem:[#allocation2 + $0x128] sm:$0xff] }
 0x194   : > { %1667 = vst [vmem:[#allocation2 + $0x178] sm:$0xff] %v1507_v43  ;;  %1059 = vmatmul.bf16.gmra.mxu1 %v3551_v16  ;;  %1326 = vmatmul.bf16.gmra.mxu0 %v3551_v16  ;;  %v425_v43 = vld [vmem:[#allocation2 + $0x320] sm:$0xff] }
 0x195   : > { %1552 = vst [vmem:[#allocation2 + $0x310] sm:$0xff] %v1392_v46  ;;  %1148 = vmatmul.bf16.gmra.mxu2 %v3551_v16  ;;  %1237 = vmatmul.bf16.gmra.mxu3 %v3551_v16  ;;  %v410_v16 = vld [vmem:[#allocation2 + $0xa0] sm:$0xff] }
 0x196   : > { %1592 = vst [vmem:[#allocation2 + $0x10] sm:$0xff] %v1432_v47 }
 0x198   : > { %v991_v52 = vpop.f32.mrf.mxu2  ;;  %v1011_v53 = vpop.f32.mrf.mxu3 }
 0x199   : > { %v1472_v54 = vadd.f32 %v991_v52, %v480_v48  ;;  %v1512_v55 = vadd.f32 %v1011_v53, %v520_v49  ;;  %v953_v56 = vpop.f32.mrf.mxu0  ;;  %v973_v57 = vpop.f32.mrf.mxu1  ;;  %v505_v53 = vld [vmem:[#allocation2 + $0x490] sm:$0xff] }
 0x19a   : > { %v1397_v58 = vadd.f32 %v953_v56, %v405_v50  ;;  %v1437_v59 = vadd.f32 %v973_v57, %v445_v51 }
 0x19b   : > { %1632 = vst [vmem:[#allocation2 + $0x90] sm:$0xff] %v1472_v54  ;;  %v545_v54 = vld [vmem:[#allocation2 + $0x430] sm:$0xff] }
 0x19c   : > { %1672 = vst [vmem:[#allocation2 + $0x198] sm:$0xff] %v1512_v55  ;;  %v394_v55 = vld [vmem:[#allocation2 + $0x450] sm:$0xff] }
 0x19d   : > { %1557 = vst [vmem:[#allocation2 + $0x60] sm:$0xff] %v1397_v58 }
 0x19e   : > { %1597 = vst [vmem:[#allocation2 + $0x2c0] sm:$0xff] %v1437_v59 }
 0x1a0   : > { %v993_v63 = vpop.f32.mrf.mxu2  ;;  %v1013_v0 = vpop.f32.mrf.mxu3 }
 0x1a1   : > { %v1477_v1 = vadd.f32 %v993_v63, %v485_v60  ;;  %v1517_v2 = vadd.f32 %v1013_v0, %v525_v61  ;;  %v956_v3 = vpop.f32.mrf.mxu0  ;;  %v976_v4 = vpop.f32.mrf.mxu1  ;;  %v392_v63 = vld [vmem:[#allocation2 + $0x4d8] sm:$0xff] }
 0x1a2   : > { %v1402_v5 = vadd.f32 %v956_v3, %v410_v16  ;;  %v1442_v9 = vadd.f32 %v976_v4, %v450_v62  ;;  %v393_v0 = vld [vmem:[#allocation2 + $0x18] sm:$0xff] }
 0x1a3   : > { %1637 = vst [vmem:[#allocation2 + $0x130] sm:$0xff] %v1477_v1  ;;  %v396_v1 = vld [vmem:[#allocation2 + $0x440] sm:$0xff] }
 0x1a4   : > { %1677 = vst [vmem:[#allocation2 + $0x4d0] sm:$0xff] %v1517_v2  ;;  %1064 = vmatmul.bf16.gmra.mxu1 %v3593_v6  ;;  %1331 = vmatmul.bf16.gmra.mxu0 %v3593_v6  ;;  %v399_v2 = vld [vmem:[#allocation2 + $0x488] sm:$0xff] }
 0x1a5   : > { %1562 = vst [vmem:[#allocation2 + $0xa0] sm:$0xff] %v1402_v5  ;;  %1153 = vmatmul.bf16.gmra.mxu2 %v3593_v6  ;;  %1242 = vmatmul.bf16.gmra.mxu3 %v3593_v6  ;;  %v420_v6 = vld [vmem:[#allocation2 + $0x1a8] sm:$0xff] }
 0x1a6   : > { %1602 = vst [vmem:[#allocation2 + $0x40] sm:$0xff] %v1442_v9 }
 0x1a8   : > { %v996_v18 = vpop.f32.mrf.mxu2  ;;  %v1016_v19 = vpop.f32.mrf.mxu3 }
 0x1a9   : > { %v1482_v15 = vadd.f32 %v996_v18, %v490_v13  ;;  %v1522_v20 = vadd.f32 %v1016_v19, %v530_v14  ;;  %v958_v21 = vpop.f32.mrf.mxu0  ;;  %v978_v22 = vpop.f32.mrf.mxu1  ;;  %v397_v18 = vld [vmem:[#allocation2 + $0x378] sm:$0xff]  ;;  %v398_v19 = vld [vmem:[#allocation2 + $0x108] sm:$0xff] }
 0x1aa   : > { %v1407_v23 = vadd.f32 %v958_v21, %v415_v17  ;;  %v1447_v24 = vadd.f32 %v978_v22, %v455_v29 }
 0x1ab   : > { %1642 = vst [vmem:[#allocation2 + $0x368] sm:$0xff] %v1482_v15  ;;  %v404_v15 = vld [vmem:[#allocation2 + $0x398] sm:$0xff] }
 0x1ac   : > { %1682 = vst [vmem:[#allocation2 + $0x4e0] sm:$0xff] %v1522_v20 }
 0x1ad   : > { %1567 = vst [vmem:[#allocation2 + $0x4a0] sm:$0xff] %v1407_v23 }
 0x1ae   : > { %1607 = vst [vmem:[#allocation2 + $0x3a0] sm:$0xff] %v1447_v24 }
 0x1b0   : > { %v998_v28 = vpop.f32.mrf.mxu2  ;;  %v1018_v33 = vpop.f32.mrf.mxu3 }
 0x1b1   : > { %v1487_v34 = vadd.f32 %v998_v28, %v495_v25  ;;  %v1527_v35 = vadd.f32 %v1018_v33, %v535_v26  ;;  %v961_v36 = vpop.f32.mrf.mxu0  ;;  %v981_v37 = vpop.f32.mrf.mxu1  ;;  %v403_v28 = vld [vmem:[#allocation2 + $0x2a8] sm:$0xff]  ;;  %v406_v33 = vld [vmem:[#allocation2 + $0xd8] sm:$0xff] }
 0x1b2   : > { %v1412_v30 = vadd.f32 %v961_v36, %v420_v6  ;;  %v1452_v38 = vadd.f32 %v981_v37, %v460_v27  ;;  %v402_v27 = vld [vmem:[#allocation2 + $0x308] sm:$0xff] }
 0x1b3   : > { %1647 = vst [vmem:[#allocation2 + $0x408] sm:$0xff] %v1487_v34  ;;  %v409_v34 = vld [vmem:[#allocation2 + $0x220] sm:$0xff] }
 0x1b4   : > { %1687 = vst [vmem:[#allocation2 + $0xe0] sm:$0xff] %v1527_v35  ;;  %1069 = vmatmul.bf16.gmra.mxu1 %v3606_v10  ;;  %1336 = vmatmul.bf16.gmra.mxu0 %v3606_v10 }
 0x1b5   : > { %1572 = vst [vmem:[#allocation2 + $0x1a8] sm:$0xff] %v1412_v30  ;;  %1158 = vmatmul.bf16.gmra.mxu2 %v3606_v10  ;;  %1247 = vmatmul.bf16.gmra.mxu3 %v3606_v10  ;;  %v391_v10 = vld [vmem:[#allocation2 + $0x3b0] sm:$0xff] }
 0x1b6   : > { %1612 = vst [vmem:[#allocation2 + $0x288] sm:$0xff] %v1452_v38 }
 0x1b8   : > { %v1001_v45 = vpop.f32.mrf.mxu2  ;;  %v1021_v46 = vpop.f32.mrf.mxu3 }
 0x1b9   : > { %v1492_v47 = vadd.f32 %v1001_v45, %v500_v39  ;;  %v1532_v48 = vadd.f32 %v1021_v46, %v540_v40  ;;  %v963_v49 = vpop.f32.mrf.mxu0  ;;  %v983_v50 = vpop.f32.mrf.mxu1  ;;  %v408_v45 = vld [vmem:[#allocation2 + $0x160] sm:$0xff]  ;;  %v414_v46 = vld [vmem:[#allocation2 + $0x458] sm:$0xff] }
 0x1ba   : > { %v1417_v51 = vadd.f32 %v963_v49, %v425_v43  ;;  %v1457_v52 = vadd.f32 %v983_v50, %v465_v44  ;;  %v407_v44 = vld [vmem:[#allocation2 + $0x388] sm:$0xff] }
 0x1bb   : > { %1652 = vst [vmem:[#allocation2 + $0x420] sm:$0xff] %v1492_v47 }
 0x1bc   : > { %1692 = vst [vmem:[#allocation2 + $0x128] sm:$0xff] %v1532_v48 }
 0x1bd   : > { %1577 = vst [vmem:[#allocation2 + $0x320] sm:$0xff] %v1417_v51 }
 0x1be   : > { %1617 = vst [vmem:[#allocation2 + $0x50] sm:$0xff] %v1457_v52 }
 0x1c0   : > { %v1003_v56 = vpop.f32.mrf.mxu2  ;;  %v1023_v57 = vpop.f32.mrf.mxu3 }
 0x1c1   : > { %v1497_v58 = vadd.f32 %v1003_v56, %v505_v53  ;;  %v1537_v59 = vadd.f32 %v1023_v57, %v545_v54  ;;  %v1035_v60 = vpop.f32.mrf.mxu1  ;;  %v1302_v61 = vpop.f32.mrf.mxu0  ;;  %v416_v56 = vld [vmem:[#allocation2 + $0x390] sm:$0xff]  ;;  %v419_v57 = vld [vmem:[#allocation2 + $0x480] sm:$0xff] }
 0x1c2   : > { %v1383_v16 = vadd.f32 %v1035_v60, %v391_v10  ;;  %v1386_v62 = vadd.f32 %v1302_v61, %v394_v55  ;;  %v412_v10 = vld [vmem:[#allocation2 + $0x4f8] sm:$0xff]  ;;  %v413_v55 = vld [vmem:[#allocation2 + $0x380] sm:$0xff] }
 0x1c3   : > { %1657 = vst [vmem:[#allocation2 + $0x490] sm:$0xff] %v1497_v58 }
 0x1c4   : > { %1697 = vst [vmem:[#allocation2 + $0x430] sm:$0xff] %v1537_v59  ;;  %1074 = vmatmul.bf16.gmra.mxu1 %v3514_v41  ;;  %1341 = vmatmul.bf16.gmra.mxu0 %v3514_v41 }
 0x1c5   : > { %1543 = vst [vmem:[#allocation2 + $0x3b0] sm:$0xff] %v1383_v16  ;;  %1163 = vmatmul.bf16.gmra.mxu2 %v3514_v41  ;;  %1252 = vmatmul.bf16.gmra.mxu3 %v3514_v41  ;;  %v401_v41 = vld [vmem:[#allocation2 + $0x4f0] sm:$0xff] }
 0x1c6   : > { %1546 = vst [vmem:[#allocation2 + $0x450] sm:$0xff] %v1386_v62 }
 0x1c8   : > { %v1124_v3 = vpop.f32.mrf.mxu2  ;;  %v1213_v4 = vpop.f32.mrf.mxu3 }
 0x1c9   : > { %v1384_v5 = vadd.f32 %v1124_v3, %v392_v63  ;;  %v1385_v9 = vadd.f32 %v1213_v4, %v393_v0  ;;  %v1037_v13 = vpop.f32.mrf.mxu1  ;;  %v1304_v14 = vpop.f32.mrf.mxu0  ;;  %v424_v3 = vld [vmem:[#allocation2 + $0xb0] sm:$0xff] }
 0x1ca   : > { %v1388_v17 = vadd.f32 %v1037_v13, %v396_v1  ;;  %v1391_v29 = vadd.f32 %v1304_v14, %v399_v2  ;;  %v417_v1 = vld [vmem:[#allocation2 + $0xb8] sm:$0xff]  ;;  %v418_v2 = vld [vmem:[#allocation2 + $0x270] sm:$0xff] }
 0x1cb   : > { %1544 = vst [vmem:[#allocation2 + $0x4d8] sm:$0xff] %v1384_v5 }
 0x1cc   : > { %1545 = vst [vmem:[#allocation2 + $0x18] sm:$0xff] %v1385_v9 }
 0x1cd   : > { %1548 = vst [vmem:[#allocation2 + $0x440] sm:$0xff] %v1388_v17 }
 0x1ce   : > { %1551 = vst [vmem:[#allocation2 + $0x488] sm:$0xff] %v1391_v29 }
 0x1d0   : > { %v1126_v20 = vpop.f32.mrf.mxu2  ;;  %v1215_v21 = vpop.f32.mrf.mxu3 }
 0x1d1   : > { %v1389_v22 = vadd.f32 %v1126_v20, %v397_v18  ;;  %v1390_v23 = vadd.f32 %v1215_v21, %v398_v19  ;;  %v1040_v24 = vpop.f32.mrf.mxu1  ;;  %v1307_v25 = vpop.f32.mrf.mxu0  ;;  %v422_v19 = vld [vmem:[#allocation2 + $0x38] sm:$0xff]  ;;  %v429_v20 = vld [vmem:[#allocation2 + $0x20] sm:$0xff] }
 0x1d2   : > { %v1393_v26 = vadd.f32 %v1040_v24, %v401_v41  ;;  %v1396_v6 = vadd.f32 %v1307_v25, %v404_v15  ;;  %v423_v41 = vld [vmem:[#allocation2 + $0x3f8] sm:$0xff]  ;;  %v426_v15 = vld [vmem:[#allocation2 + $0x188] sm:$0xff] }
 0x1d3   : > { %1549 = vst [vmem:[#allocation2 + $0x378] sm:$0xff] %v1389_v22 }
 0x1d4   : > { %1550 = vst [vmem:[#allocation2 + $0x108] sm:$0xff] %v1390_v23  ;;  %1079 = vmatmul.bf16.gmra.mxu1 %v3562_v31  ;;  %1346 = vmatmul.bf16.gmra.mxu0 %v3562_v31 }
 0x1d5   : > { %1553 = vst [vmem:[#allocation2 + $0x4f0] sm:$0xff] %v1393_v26  ;;  %1168 = vmatmul.bf16.gmra.mxu2 %v3562_v31  ;;  %1257 = vmatmul.bf16.gmra.mxu3 %v3562_v31  ;;  %v411_v31 = vld [vmem:[#allocation2 + $0x360] sm:$0xff] }
 0x1d6   : > { %1556 = vst [vmem:[#allocation2 + $0x398] sm:$0xff] %v1396_v6 }
 0x1d8   : > { %v1129_v35 = vpop.f32.mrf.mxu2  ;;  %v1218_v36 = vpop.f32.mrf.mxu3 }
 0x1d9   : > { %v1394_v37 = vadd.f32 %v1129_v35, %v402_v27  ;;  %v1395_v30 = vadd.f32 %v1218_v36, %v403_v28  ;;  %v1042_v38 = vpop.f32.mrf.mxu1  ;;  %v1309_v39 = vpop.f32.mrf.mxu0  ;;  %v427_v28 = vld [vmem:[#allocation2 + $0x210] sm:$0xff] }
 0x1da   : > { %v1398_v40 = vadd.f32 %v1042_v38, %v406_v33  ;;  %v1401_v43 = vadd.f32 %v1309_v39, %v409_v34  ;;  %v428_v33 = vld [vmem:[#allocation2 + $0x78] sm:$0xff]  ;;  %v434_v34 = vld [vmem:[#allocation2 + $0x48] sm:$0xff] }
 0x1db   : > { %1554 = vst [vmem:[#allocation2 + $0x308] sm:$0xff] %v1394_v37 }
 0x1dc   : > { %1555 = vst [vmem:[#allocation2 + $0x2a8] sm:$0xff] %v1395_v30 }
 0x1dd   : > { %1558 = vst [vmem:[#allocation2 + $0xd8] sm:$0xff] %v1398_v40 }
 0x1de   : > { %1561 = vst [vmem:[#allocation2 + $0x220] sm:$0xff] %v1401_v43 }
 0x1e0   : > { %v1131_v47 = vpop.f32.mrf.mxu2  ;;  %v1220_v48 = vpop.f32.mrf.mxu3 }
 0x1e1   : > { %v1399_v49 = vadd.f32 %v1131_v47, %v407_v44  ;;  %v1400_v50 = vadd.f32 %v1220_v48, %v408_v45  ;;  %v1045_v51 = vpop.f32.mrf.mxu1  ;;  %v1312_v52 = vpop.f32.mrf.mxu0  ;;  %v432_v44 = vld [vmem:[#allocation2 + $0x3b8] sm:$0xff]  ;;  %v433_v45 = vld [vmem:[#allocation2 + $0x8] sm:$0xff] }
 0x1e2   : > { %v1403_v53 = vadd.f32 %v1045_v51, %v411_v31  ;;  %v1406_v54 = vadd.f32 %v1312_v52, %v414_v46  ;;  %v436_v31 = vld [vmem:[#allocation2 + $0x4a8] sm:$0xff]  ;;  %v439_v46 = vld [vmem:[#allocation2 + $0x1f0] sm:$0xff] }
 0x1e3   : > { %1559 = vst [vmem:[#allocation2 + $0x388] sm:$0xff] %v1399_v49 }
 0x1e4   : > { %1560 = vst [vmem:[#allocation2 + $0x160] sm:$0xff] %v1400_v50  ;;  %1084 = vmatmul.bf16.gmra.mxu1 %v3596_v7  ;;  %1351 = vmatmul.bf16.gmra.mxu0 %v3596_v7 }
 0x1e5   : > { %1563 = vst [vmem:[#allocation2 + $0x360] sm:$0xff] %v1403_v53  ;;  %1173 = vmatmul.bf16.gmra.mxu2 %v3596_v7  ;;  %1262 = vmatmul.bf16.gmra.mxu3 %v3596_v7  ;;  %v421_v7 = vld [vmem:[#allocation2 + $0x2a0] sm:$0xff] }
 0x1e6   : > { %1566 = vst [vmem:[#allocation2 + $0x458] sm:$0xff] %v1406_v54 }
 0x1e8   : > { %v1134_v58 = vpop.f32.mrf.mxu2  ;;  %v1223_v59 = vpop.f32.mrf.mxu3 }
 0x1e9   : > { %v1404_v60 = vadd.f32 %v1134_v58, %v412_v10  ;;  %v1405_v61 = vadd.f32 %v1223_v59, %v413_v55  ;;  %v1047_v16 = vpop.f32.mrf.mxu1  ;;  %v1314_v62 = vpop.f32.mrf.mxu0  ;;  %v437_v10 = vld [vmem:[#allocation2 + $0x218] sm:$0xff]  ;;  %v438_v55 = vld [vmem:[#allocation2 + $0x168] sm:$0xff] }
 0x1ea   : > { %v1408_v63 = vadd.f32 %v1047_v16, %v416_v56  ;;  %v1411_v0 = vadd.f32 %v1314_v62, %v419_v57  ;;  %v444_v56 = vld [vmem:[#allocation2 + $0x260] sm:$0xff] }
 0x1eb   : > { %1564 = vst [vmem:[#allocation2 + $0x4f8] sm:$0xff] %v1404_v60 }
 0x1ec   : > { %1565 = vst [vmem:[#allocation2 + $0x380] sm:$0xff] %v1405_v61 }
 0x1ed   : > { %1568 = vst [vmem:[#allocation2 + $0x390] sm:$0xff] %v1408_v63 }
 0x1ee   : > { %1571 = vst [vmem:[#allocation2 + $0x480] sm:$0xff] %v1411_v0  ;;  %v442_v0 = vld [vmem:[#allocation2 + $0x2e8] sm:$0xff] }
 0x1f0   : > { %v1136_v4 = vpop.f32.mrf.mxu2  ;;  %v1225_v5 = vpop.f32.mrf.mxu3 }
 0x1f1   : > { %v1409_v9 = vadd.f32 %v1136_v4, %v417_v1  ;;  %v1410_v13 = vadd.f32 %v1225_v5, %v418_v2  ;;  %v1050_v14 = vpop.f32.mrf.mxu1  ;;  %v1317_v17 = vpop.f32.mrf.mxu0  ;;  %v443_v1 = vld [vmem:[#allocation2 + $0x258] sm:$0xff]  ;;  %v446_v2 = vld [vmem:[#allocation2 + $0x140] sm:$0xff] }
 0x1f2   : > { %v1413_v29 = vadd.f32 %v1050_v14, %v421_v7  ;;  %v1416_v18 = vadd.f32 %v1317_v17, %v424_v3  ;;  %v449_v7 = vld [vmem:[#allocation2 + $0x4c0] sm:$0xff] }
 0x1f3   : > { %1569 = vst [vmem:[#allocation2 + $0xb8] sm:$0xff] %v1409_v9 }
 0x1f4   : > { %1570 = vst [vmem:[#allocation2 + $0x270] sm:$0xff] %v1410_v13  ;;  %1089 = vmatmul.bf16.gmra.mxu1 %v3609_v11  ;;  %1356 = vmatmul.bf16.gmra.mxu0 %v3609_v11 }
 0x1f5   : > { %1573 = vst [vmem:[#allocation2 + $0x2a0] sm:$0xff] %v1413_v29  ;;  %1178 = vmatmul.bf16.gmra.mxu2 %v3609_v11  ;;  %1267 = vmatmul.bf16.gmra.mxu3 %v3609_v11  ;;  %v431_v11 = vld [vmem:[#allocation2 + $0x280] sm:$0xff] }
 0x1f6   : > { %1576 = vst [vmem:[#allocation2 + $0xb0] sm:$0xff] %v1416_v18  ;;  %v447_v18 = vld [vmem:[#allocation2 + $0xf8] sm:$0xff] }
 0x1f8   : > { %v1139_v21 = vpop.f32.mrf.mxu2  ;;  %v1228_v22 = vpop.f32.mrf.mxu3 }
 0x1f9   : > { %v1414_v23 = vadd.f32 %v1139_v21, %v422_v19  ;;  %v1415_v24 = vadd.f32 %v1228_v22, %v423_v41  ;;  %v1052_v25 = vpop.f32.mrf.mxu1  ;;  %v1319_v26 = vpop.f32.mrf.mxu0  ;;  %v448_v19 = vld [vmem:[#allocation2 + $0x70] sm:$0xff]  ;;  %v454_v41 = vld [vmem:[#allocation2 + $0x318] sm:$0xff] }
 0x1fa   : > { %v1418_v6 = vadd.f32 %v1052_v25, %v426_v15  ;;  %v1421_v27 = vadd.f32 %v1319_v26, %v429_v20 }
 0x1fb   : > { %1574 = vst [vmem:[#allocation2 + $0x38] sm:$0xff] %v1414_v23 }
 0x1fc   : > { %1575 = vst [vmem:[#allocation2 + $0x3f8] sm:$0xff] %v1415_v24 }
 0x1fd   : > { %1578 = vst [vmem:[#allocation2 + $0x188] sm:$0xff] %v1418_v6  ;;  %v452_v6 = vld [vmem:[#allocation2 + $0x250] sm:$0xff] }
 0x1fe   : > { %1581 = vst [vmem:[#allocation2 + $0x20] sm:$0xff] %v1421_v27  ;;  %v453_v27 = vld [vmem:[#allocation2 + $0x1e0] sm:$0xff] }
 0x200   : > { %v1141_v35 = vpop.f32.mrf.mxu2  ;;  %v1230_v36 = vpop.f32.mrf.mxu3 }
 0x201   : > { %v1419_v37 = vadd.f32 %v1141_v35, %v427_v28  ;;  %v1420_v30 = vadd.f32 %v1230_v36, %v428_v33  ;;  %v1055_v38 = vpop.f32.mrf.mxu1  ;;  %v1322_v39 = vpop.f32.mrf.mxu0  ;;  %v456_v28 = vld [vmem:[#allocation2 + $0x80] sm:$0xff]  ;;  %v459_v33 = vld [vmem:[#allocation2 + $0x348] sm:$0xff] }
 0x202   : > { %v1423_v40 = vadd.f32 %v1055_v38, %v431_v11  ;;  %v1426_v43 = vadd.f32 %v1322_v39, %v434_v34 }
 0x203   : > { %1579 = vst [vmem:[#allocation2 + $0x210] sm:$0xff] %v1419_v37 }
 0x204   : > { %1580 = vst [vmem:[#allocation2 + $0x78] sm:$0xff] %v1420_v30  ;;  %1094 = vmatmul.bf16.gmra.mxu1 %v3517_v42  ;;  %1361 = vmatmul.bf16.gmra.mxu0 %v3517_v42 }
 0x205   : > { %1583 = vst [vmem:[#allocation2 + $0x280] sm:$0xff] %v1423_v40  ;;  %1183 = vmatmul.bf16.gmra.mxu2 %v3517_v42  ;;  %1272 = vmatmul.bf16.gmra.mxu3 %v3517_v42  ;;  %v441_v42 = vld [vmem:[#allocation2 + $0x1f8] sm:$0xff]  ;;  %v457_v40 = vld [vmem:[#allocation2 + $0x400] sm:$0xff] }
 0x206   : > { %1586 = vst [vmem:[#allocation2 + $0x48] sm:$0xff] %v1426_v43  ;;  %v458_v43 = vld [vmem:[#allocation2 + $0x228] sm:$0xff] }
 0x208   : > { %v1144_v47 = vpop.f32.mrf.mxu2  ;;  %v1233_v48 = vpop.f32.mrf.mxu3 }
 0x209   : > { %v1424_v49 = vadd.f32 %v1144_v47, %v432_v44  ;;  %v1425_v50 = vadd.f32 %v1233_v48, %v433_v45  ;;  %v1057_v51 = vpop.f32.mrf.mxu1  ;;  %v1324_v52 = vpop.f32.mrf.mxu0  ;;  %v464_v44 = vld [vmem:[#allocation2 + $0x200] sm:$0xff] }
 0x20a   : > { %v1428_v53 = vadd.f32 %v1057_v51, %v436_v31  ;;  %v1431_v54 = vadd.f32 %v1324_v52, %v439_v46  ;;  %v462_v52 = vld [vmem:[#allocation2 + $0x4b0] sm:$0xff] }
 0x20b   : > { %1584 = vst [vmem:[#allocation2 + $0x3b8] sm:$0xff] %v1424_v49 }
 0x20c   : > { %1585 = vst [vmem:[#allocation2 + $0x8] sm:$0xff] %v1425_v50 }
 0x20d   : > { %1588 = vst [vmem:[#allocation2 + $0x4a8] sm:$0xff] %v1428_v53  ;;  %v463_v53 = vld [vmem:[#allocation2 + $0x1d8] sm:$0xff] }
 0x20e   : > { %1591 = vst [vmem:[#allocation2 + $0x1f0] sm:$0xff] %v1431_v54  ;;  %v466_v54 = vld [vmem:[#allocation2 + $0x1b0] sm:$0xff] }
 0x210   : > { %v1146_v57 = vpop.f32.mrf.mxu2  ;;  %v1235_v58 = vpop.f32.mrf.mxu3 }
 0x211   : > { %v1429_v59 = vadd.f32 %v1146_v57, %v437_v10  ;;  %v1430_v60 = vadd.f32 %v1235_v58, %v438_v55  ;;  %v1060_v61 = vpop.f32.mrf.mxu1  ;;  %v1327_v16 = vpop.f32.mrf.mxu0  ;;  %v469_v10 = vld [vmem:[#allocation2 + $0x190] sm:$0xff] }
 0x212   : > { %v1433_v62 = vadd.f32 %v1060_v61, %v441_v42  ;;  %v1436_v63 = vadd.f32 %v1327_v16, %v444_v56  ;;  %v467_v16 = vld [vmem:[#allocation2 + $0x150] sm:$0xff] }
 0x213   : > { %1589 = vst [vmem:[#allocation2 + $0x218] sm:$0xff] %v1429_v59 }
 0x214   : > { %1590 = vst [vmem:[#allocation2 + $0x168] sm:$0xff] %v1430_v60  ;;  %1099 = vmatmul.bf16.gmra.mxu1 %v3565_v32  ;;  %1366 = vmatmul.bf16.gmra.mxu0 %v3565_v32 }
 0x215   : > { %1593 = vst [vmem:[#allocation2 + $0x1f8] sm:$0xff] %v1433_v62  ;;  %1188 = vmatmul.bf16.gmra.mxu2 %v3565_v32  ;;  %1277 = vmatmul.bf16.gmra.mxu3 %v3565_v32  ;;  %v451_v32 = vld [vmem:[#allocation2 + $0x350] sm:$0xff]  ;;  %v468_v62 = vld [vmem:[#allocation2 + $0x4e8] sm:$0xff] }
 0x216   : > { %1596 = vst [vmem:[#allocation2 + $0x260] sm:$0xff] %v1436_v63  ;;  %v474_v63 = vld [vmem:[#allocation2 + $0x88] sm:$0xff] }
 0x218   : > { %v1149_v3 = vpop.f32.mrf.mxu2  ;;  %v1238_v4 = vpop.f32.mrf.mxu3 }
 0x219   : > { %v1434_v5 = vadd.f32 %v1149_v3, %v442_v0  ;;  %v1435_v9 = vadd.f32 %v1238_v4, %v443_v1  ;;  %v1062_v13 = vpop.f32.mrf.mxu1  ;;  %v1329_v14 = vpop.f32.mrf.mxu0 }
 0x21a   : > { %v1438_v17 = vadd.f32 %v1062_v13, %v446_v2  ;;  %v1441_v29 = vadd.f32 %v1329_v14, %v449_v7  ;;  %v472_v13 = vld [vmem:[#allocation2 + $0x358] sm:$0xff] }
 0x21b   : > { %1594 = vst [vmem:[#allocation2 + $0x2e8] sm:$0xff] %v1434_v5  ;;  %v473_v14 = vld [vmem:[#allocation2 + $0x158] sm:$0xff] }
 0x21c   : > { %1595 = vst [vmem:[#allocation2 + $0x258] sm:$0xff] %v1435_v9 }
 0x21d   : > { %1598 = vst [vmem:[#allocation2 + $0x140] sm:$0xff] %v1438_v17  ;;  %v476_v17 = vld [vmem:[#allocation2] sm:$0xff] }
 0x21e   : > { %1601 = vst [vmem:[#allocation2 + $0x4c0] sm:$0xff] %v1441_v29  ;;  %v479_v29 = vld [vmem:[#allocation2 + $0x478] sm:$0xff] }
 0x220   : > { %v1151_v15 = vpop.f32.mrf.mxu2  ;;  %v1240_v20 = vpop.f32.mrf.mxu3 }
 0x221   : > { %v1439_v21 = vadd.f32 %v1151_v15, %v447_v18  ;;  %v1440_v22 = vadd.f32 %v1240_v20, %v448_v19  ;;  %v1065_v23 = vpop.f32.mrf.mxu1  ;;  %v1332_v24 = vpop.f32.mrf.mxu0 }
 0x222   : > { %v1443_v25 = vadd.f32 %v1065_v23, %v451_v32  ;;  %v1446_v26 = vadd.f32 %v1332_v24, %v454_v41  ;;  %v477_v23 = vld [vmem:[#allocation2 + $0x2d0] sm:$0xff]  ;;  %v478_v24 = vld [vmem:[#allocation2 + $0x278] sm:$0xff] }
 0x223   : > { %1599 = vst [vmem:[#allocation2 + $0xf8] sm:$0xff] %v1439_v21 }
 0x224   : > { %1600 = vst [vmem:[#allocation2 + $0x70] sm:$0xff] %v1440_v22  ;;  %1104 = vmatmul.bf16.gmra.mxu1 %v3599_v8  ;;  %1371 = vmatmul.bf16.gmra.mxu0 %v3599_v8 }
 0x225   : > { %1603 = vst [vmem:[#allocation2 + $0x350] sm:$0xff] %v1443_v25  ;;  %1193 = vmatmul.bf16.gmra.mxu2 %v3599_v8  ;;  %1282 = vmatmul.bf16.gmra.mxu3 %v3599_v8  ;;  %v461_v8 = vld [vmem:[#allocation2 + $0x460] sm:$0xff]  ;;  %v481_v25 = vld [vmem:[#allocation2 + $0x138] sm:$0xff] }
 0x226   : > { %1606 = vst [vmem:[#allocation2 + $0x318] sm:$0xff] %v1446_v26  ;;  %v484_v26 = vld [vmem:[#allocation2 + $0x3e0] sm:$0xff] }
 0x228   : > { %v1154_v11 = vpop.f32.mrf.mxu2  ;;  %v1243_v34 = vpop.f32.mrf.mxu3 }
 0x229   : > { %v1444_v35 = vadd.f32 %v1154_v11, %v452_v6  ;;  %v1445_v36 = vadd.f32 %v1243_v34, %v453_v27  ;;  %v1067_v37 = vpop.f32.mrf.mxu1  ;;  %v1334_v30 = vpop.f32.mrf.mxu0 }
 0x22a   : > { %v1448_v38 = vadd.f32 %v1067_v37, %v456_v28  ;;  %v1451_v39 = vadd.f32 %v1334_v30, %v459_v33  ;;  %v482_v37 = vld [vmem:[#allocation2 + $0x438] sm:$0xff]  ;;  %v483_v30 = vld [vmem:[#allocation2 + $0x2c8] sm:$0xff] }
 0x22b   : > { %1604 = vst [vmem:[#allocation2 + $0x250] sm:$0xff] %v1444_v35 }
 0x22c   : > { %1605 = vst [vmem:[#allocation2 + $0x1e0] sm:$0xff] %v1445_v36 }
 0x22d   : > { %1608 = vst [vmem:[#allocation2 + $0x80] sm:$0xff] %v1448_v38  ;;  %v486_v38 = vld [vmem:[#allocation2 + $0x298] sm:$0xff] }
 0x22e   : > { %1611 = vst [vmem:[#allocation2 + $0x348] sm:$0xff] %v1451_v39  ;;  %v489_v39 = vld [vmem:[#allocation2 + $0x3c0] sm:$0xff] }
 0x230   : > { %v1156_v45 = vpop.f32.mrf.mxu2  ;;  %v1245_v31 = vpop.f32.mrf.mxu3 }
 0x231   : > { %v1449_v46 = vadd.f32 %v1156_v45, %v457_v40  ;;  %v1450_v47 = vadd.f32 %v1245_v31, %v458_v43  ;;  %v1070_v48 = vpop.f32.mrf.mxu1  ;;  %v1337_v49 = vpop.f32.mrf.mxu0 }
 0x232   : > { %v1453_v50 = vadd.f32 %v1070_v48, %v461_v8  ;;  %v1456_v51 = vadd.f32 %v1337_v49, %v464_v44  ;;  %v487_v48 = vld [vmem:[#allocation2 + $0x2f8] sm:$0xff]  ;;  %v488_v49 = vld [vmem:[#allocation2 + $0x68] sm:$0xff] }
 0x233   : > { %1609 = vst [vmem:[#allocation2 + $0x400] sm:$0xff] %v1449_v46 }
 0x234   : > { %1610 = vst [vmem:[#allocation2 + $0x228] sm:$0xff] %v1450_v47  ;;  %1109 = vmatmul.bf16.gmra.mxu1 %v3612_v12  ;;  %1376 = vmatmul.bf16.gmra.mxu0 %v3612_v12 }
 0x235   : > { %1613 = vst [vmem:[#allocation2 + $0x460] sm:$0xff] %v1453_v50  ;;  %1198 = vmatmul.bf16.gmra.mxu2 %v3612_v12  ;;  %1287 = vmatmul.bf16.gmra.mxu3 %v3612_v12  ;;  %v471_v12 = vld [vmem:[#allocation2 + $0x338] sm:$0xff]  ;;  %v491_v50 = vld [vmem:[#allocation2 + $0x2e0] sm:$0xff] }
 0x236   : > { %1616 = vst [vmem:[#allocation2 + $0x200] sm:$0xff] %v1456_v51  ;;  %v494_v51 = vld [vmem:[#allocation2 + $0x3d8] sm:$0xff] }
 0x238   : > { %v1159_v55 = vpop.f32.mrf.mxu2  ;;  %v1248_v42 = vpop.f32.mrf.mxu3 }
 0x239   : > { %v1454_v56 = vadd.f32 %v1159_v55, %v462_v52  ;;  %v1455_v57 = vadd.f32 %v1248_v42, %v463_v53  ;;  %v1072_v58 = vpop.f32.mrf.mxu1  ;;  %v1339_v59 = vpop.f32.mrf.mxu0 }
 0x23a   : > { %v1458_v60 = vadd.f32 %v1072_v58, %v466_v54  ;;  %v1461_v61 = vadd.f32 %v1339_v59, %v469_v10  ;;  %v492_v58 = vld [vmem:[#allocation2 + $0x3a8] sm:$0xff] }
 0x23b   : > { %1614 = vst [vmem:[#allocation2 + $0x4b0] sm:$0xff] %v1454_v56  ;;  %v493_v59 = vld [vmem:[#allocation2 + $0x1c8] sm:$0xff] }
 0x23c   : > { %1615 = vst [vmem:[#allocation2 + $0x1d8] sm:$0xff] %v1455_v57 }
 0x23d   : > { %1618 = vst [vmem:[#allocation2 + $0x1b0] sm:$0xff] %v1458_v60  ;;  %v496_v60 = vld [vmem:[#allocation2 + $0xe8] sm:$0xff] }
 0x23e   : > { %1621 = vst [vmem:[#allocation2 + $0x190] sm:$0xff] %v1461_v61  ;;  %v499_v61 = vld [vmem:[#allocation2 + $0xc8] sm:$0xff] }
 0x240   : > { %v1161_v0 = vpop.f32.mrf.mxu2  ;;  %v1250_v1 = vpop.f32.mrf.mxu3 }
 0x241   : > { %v1459_v2 = vadd.f32 %v1161_v0, %v467_v16  ;;  %v1460_v7 = vadd.f32 %v1250_v1, %v468_v62  ;;  %v1075_v3 = vpop.f32.mrf.mxu1  ;;  %v1342_v4 = vpop.f32.mrf.mxu0 }
 0x242   : > { %v1463_v5 = vadd.f32 %v1075_v3, %v471_v12  ;;  %v1466_v9 = vadd.f32 %v1342_v4, %v474_v63  ;;  %v497_v3 = vld [vmem:[#allocation2 + $0x98] sm:$0xff]  ;;  %v498_v4 = vld [vmem:[#allocation2 + $0x410] sm:$0xff] }
 0x243   : > { %1619 = vst [vmem:[#allocation2 + $0x150] sm:$0xff] %v1459_v2 }
 0x244   : > { %1620 = vst [vmem:[#allocation2 + $0x4e8] sm:$0xff] %v1460_v7 }
 0x245   : > { %1623 = vst [vmem:[#allocation2 + $0x338] sm:$0xff] %v1463_v5  ;;  %v501_v5 = vld [vmem:[#allocation2 + $0x28] sm:$0xff] }
 0x246   : > { %1626 = vst [vmem:[#allocation2 + $0x88] sm:$0xff] %v1466_v9  ;;  %v504_v9 = vld [vmem:[#allocation2 + $0x118] sm:$0xff] }
 0x248   : > { %v1164_v18 = vpop.f32.mrf.mxu2  ;;  %v1253_v19 = vpop.f32.mrf.mxu3 }
 0x249   : > { %v1464_v32 = vadd.f32 %v1164_v18, %v472_v13  ;;  %v1465_v41 = vadd.f32 %v1253_v19, %v473_v14  ;;  %v1077_v15 = vpop.f32.mrf.mxu1  ;;  %v1344_v20 = vpop.f32.mrf.mxu0 }
 0x24a   : > { %v1468_v21 = vadd.f32 %v1077_v15, %v476_v17  ;;  %v1471_v22 = vadd.f32 %v1344_v20, %v479_v29  ;;  %v502_v15 = vld [vmem:[#allocation2 + $0x290] sm:$0xff] }
 0x24b   : > { %1624 = vst [vmem:[#allocation2 + $0x358] sm:$0xff] %v1464_v32  ;;  %v503_v20 = vld [vmem:[#allocation2 + $0x330] sm:$0xff] }
 0x24c   : > { %1625 = vst [vmem:[#allocation2 + $0x158] sm:$0xff] %v1465_v41 }
 0x24d   : > { %1628 = vst [vmem:[#allocation2] sm:$0xff] %v1468_v21  ;;  %v506_v21 = vld [vmem:[#allocation2 + $0x4c8] sm:$0xff] }
 0x24e   : > { %1631 = vst [vmem:[#allocation2 + $0x478] sm:$0xff] %v1471_v22  ;;  %v509_v22 = vld [vmem:[#allocation2 + $0x208] sm:$0xff] }
 0x250   : > { %v1166_v6 = vpop.f32.mrf.mxu2  ;;  %v1255_v27 = vpop.f32.mrf.mxu3 }
 0x251   : > { %v1469_v28 = vadd.f32 %v1166_v6, %v477_v23  ;;  %v1470_v33 = vadd.f32 %v1255_v27, %v478_v24  ;;  %v1080_v11 = vpop.f32.mrf.mxu1  ;;  %v1347_v34 = vpop.f32.mrf.mxu0 }
 0x252   : > { %v1473_v35 = vadd.f32 %v1080_v11, %v481_v25  ;;  %v1476_v36 = vadd.f32 %v1347_v34, %v484_v26  ;;  %v507_v11 = vld [vmem:[#allocation2 + $0x120] sm:$0xff]  ;;  %v508_v34 = vld [vmem:[#allocation2 + $0x1d0] sm:$0xff] }
 0x253   : > { %1629 = vst [vmem:[#allocation2 + $0x2d0] sm:$0xff] %v1469_v28 }
 0x254   : > { %1630 = vst [vmem:[#allocation2 + $0x278] sm:$0xff] %v1470_v33 }
 0x255   : > { %1633 = vst [vmem:[#allocation2 + $0x138] sm:$0xff] %v1473_v35  ;;  %v511_v35 = vld [vmem:[#allocation2 + $0x428] sm:$0xff] }
 0x256   : > { %1636 = vst [vmem:[#allocation2 + $0x3e0] sm:$0xff] %v1476_v36  ;;  %v514_v36 = vld [vmem:[#allocation2 + $0x4b8] sm:$0xff] }
 0x258   : > { %v1169_v40 = vpop.f32.mrf.mxu2  ;;  %v1258_v43 = vpop.f32.mrf.mxu3 }
 0x259   : > { %v1474_v8 = vadd.f32 %v1169_v40, %v482_v37  ;;  %v1475_v44 = vadd.f32 %v1258_v43, %v483_v30  ;;  %v1082_v45 = vpop.f32.mrf.mxu1  ;;  %v1349_v31 = vpop.f32.mrf.mxu0 }
 0x25a   : > { %v1478_v46 = vadd.f32 %v1082_v45, %v486_v38  ;;  %v1481_v47 = vadd.f32 %v1349_v31, %v489_v39  ;;  %v512_v45 = vld [vmem:[#allocation2 + $0x268] sm:$0xff]  ;;  %v513_v31 = vld [vmem:[#allocation2 + $0x180] sm:$0xff] }
 0x25b   : > { %1634 = vst [vmem:[#allocation2 + $0x438] sm:$0xff] %v1474_v8 }
 0x25c   : > { %1635 = vst [vmem:[#allocation2 + $0x2c8] sm:$0xff] %v1475_v44 }
 0x25d   : > { %1638 = vst [vmem:[#allocation2 + $0x298] sm:$0xff] %v1478_v46  ;;  %v516_v46 = vld [vmem:[#allocation2 + $0x1e8] sm:$0xff] }
 0x25e   : > { %1641 = vst [vmem:[#allocation2 + $0x3c0] sm:$0xff] %v1481_v47  ;;  %v519_v47 = vld [vmem:[#allocation2 + $0x170] sm:$0xff] }
 0x260   : > { %v1171_v52 = vpop.f32.mrf.mxu2  ;;  %v1260_v53 = vpop.f32.mrf.mxu3 }
 0x261   : > { %v1479_v54 = vadd.f32 %v1171_v52, %v487_v48  ;;  %v1480_v10 = vadd.f32 %v1260_v53, %v488_v49  ;;  %v1085_v55 = vpop.f32.mrf.mxu1  ;;  %v1352_v42 = vpop.f32.mrf.mxu0 }
 0x262   : > { %v1483_v56 = vadd.f32 %v1085_v55, %v491_v50  ;;  %v1486_v57 = vadd.f32 %v1352_v42, %v494_v51  ;;  %v517_v55 = vld [vmem:[#allocation2 + $0x2f0] sm:$0xff] }
 0x263   : > { %1639 = vst [vmem:[#allocation2 + $0x2f8] sm:$0xff] %v1479_v54  ;;  %v518_v42 = vld [vmem:[#allocation2 + $0x3f0] sm:$0xff] }
 0x264   : > { %1640 = vst [vmem:[#allocation2 + $0x68] sm:$0xff] %v1480_v10 }
 0x265   : > { %1643 = vst [vmem:[#allocation2 + $0x2e0] sm:$0xff] %v1483_v56  ;;  %v521_v56 = vld [vmem:[#allocation2 + $0x1b8] sm:$0xff] }
 0x266   : > { %1646 = vst [vmem:[#allocation2 + $0x3d8] sm:$0xff] %v1486_v57  ;;  %v524_v57 = vld [vmem:[#allocation2 + $0x248] sm:$0xff] }
 0x268   : > { %v1174_v16 = vpop.f32.mrf.mxu2  ;;  %v1263_v62 = vpop.f32.mrf.mxu3 }
 0x269   : > { %v1484_v12 = vadd.f32 %v1174_v16, %v492_v58  ;;  %v1485_v63 = vadd.f32 %v1263_v62, %v493_v59  ;;  %v1087_v0 = vpop.f32.mrf.mxu1  ;;  %v1354_v1 = vpop.f32.mrf.mxu0 }
 0x26a   : > { %v1488_v2 = vadd.f32 %v1087_v0, %v496_v60  ;;  %v1491_v7 = vadd.f32 %v1354_v1, %v499_v61  ;;  %v522_v0 = vld [vmem:[#allocation2 + $0xf0] sm:$0xff]  ;;  %v523_v1 = vld [vmem:[#allocation2 + $0x238] sm:$0xff] }
 0x26b   : > { %1644 = vst [vmem:[#allocation2 + $0x3a8] sm:$0xff] %v1484_v12 }
 0x26c   : > { %1645 = vst [vmem:[#allocation2 + $0x1c8] sm:$0xff] %v1485_v63 }
 0x26d   : > { %1648 = vst [vmem:[#allocation2 + $0xe8] sm:$0xff] %v1488_v2  ;;  %v526_v2 = vld [vmem:[#allocation2 + $0x498] sm:$0xff] }
 0x26e   : > { %1651 = vst [vmem:[#allocation2 + $0xc8] sm:$0xff] %v1491_v7  ;;  %v529_v7 = vld [vmem:[#allocation2 + $0x2d8] sm:$0xff] }
 0x270   : > { %v1176_v13 = vpop.f32.mrf.mxu2  ;;  %v1265_v14 = vpop.f32.mrf.mxu3 }
 0x271   : > { %v1489_v17 = vadd.f32 %v1176_v13, %v497_v3  ;;  %v1490_v29 = vadd.f32 %v1265_v14, %v498_v4  ;;  %v1090_v18 = vpop.f32.mrf.mxu1  ;;  %v1357_v19 = vpop.f32.mrf.mxu0 }
 0x272   : > { %v1493_v32 = vadd.f32 %v1090_v18, %v501_v5  ;;  %v1496_v41 = vadd.f32 %v1357_v19, %v504_v9  ;;  %v527_v18 = vld [vmem:[#allocation2 + $0x240] sm:$0xff] }
 0x273   : > { %1649 = vst [vmem:[#allocation2 + $0x98] sm:$0xff] %v1489_v17  ;;  %v528_v19 = vld [vmem:[#allocation2 + $0x100] sm:$0xff] }
 0x274   : > { %1650 = vst [vmem:[#allocation2 + $0x410] sm:$0xff] %v1490_v29 }
 0x275   : > { %1653 = vst [vmem:[#allocation2 + $0x28] sm:$0xff] %v1493_v32  ;;  %v531_v32 = vld [vmem:[#allocation2 + $0x30] sm:$0xff] }
 0x276   : > { %1656 = vst [vmem:[#allocation2 + $0x118] sm:$0xff] %v1496_v41  ;;  %v534_v41 = vld [vmem:[#allocation2 + $0x468] sm:$0xff] }
 0x278   : > { %v1179_v23 = vpop.f32.mrf.mxu2  ;;  %v1268_v24 = vpop.f32.mrf.mxu3 }
 0x279   : > { %v1494_v25 = vadd.f32 %v1179_v23, %v502_v15  ;;  %v1495_v26 = vadd.f32 %v1268_v24, %v503_v20  ;;  %v1092_v6 = vpop.f32.mrf.mxu1  ;;  %v1359_v27 = vpop.f32.mrf.mxu0 }
 0x27a   : > { %v1498_v28 = vadd.f32 %v1092_v6, %v506_v21  ;;  %v1501_v33 = vadd.f32 %v1359_v27, %v509_v22  ;;  %v532_v6 = vld [vmem:[#allocation2 + $0x2b8] sm:$0xff]  ;;  %v533_v27 = vld [vmem:[#allocation2 + $0x1c0] sm:$0xff] }
 0x27b   : > { %1654 = vst [vmem:[#allocation2 + $0x290] sm:$0xff] %v1494_v25 }
 0x27c   : > { %1655 = vst [vmem:[#allocation2 + $0x330] sm:$0xff] %v1495_v26 }
 0x27d   : > { %1658 = vst [vmem:[#allocation2 + $0x4c8] sm:$0xff] %v1498_v28  ;;  %v536_v28 = vld [vmem:[#allocation2 + $0x58] sm:$0xff] }
 0x27e   : > { %1661 = vst [vmem:[#allocation2 + $0x208] sm:$0xff] %v1501_v33  ;;  %v539_v33 = vld [vmem:[#allocation2 + $0x3e8] sm:$0xff] }
 0x280   : > { %v1181_v37 = vpop.f32.mrf.mxu2  ;;  %v1270_v30 = vpop.f32.mrf.mxu3 }
 0x281   : > { %v1499_v38 = vadd.f32 %v1181_v37, %v507_v11  ;;  %v1500_v39 = vadd.f32 %v1270_v30, %v508_v34  ;;  %v1095_v40 = vpop.f32.mrf.mxu1  ;;  %v1362_v43 = vpop.f32.mrf.mxu0 }
 0x282   : > { %v1503_v8 = vadd.f32 %v1095_v40, %v511_v35  ;;  %v1506_v44 = vadd.f32 %v1362_v43, %v514_v36  ;;  %v537_v40 = vld [vmem:[#allocation2 + $0x3d0] sm:$0xff]  ;;  %v538_v43 = vld [vmem:[#allocation2 + $0x340] sm:$0xff] }
 0x283   : > { %1659 = vst [vmem:[#allocation2 + $0x120] sm:$0xff] %v1499_v38 }
 0x284   : > { %1660 = vst [vmem:[#allocation2 + $0x1d0] sm:$0xff] %v1500_v39 }
 0x285   : > { %1663 = vst [vmem:[#allocation2 + $0x428] sm:$0xff] %v1503_v8  ;;  %v541_v8 = vld [vmem:[#allocation2 + $0x470] sm:$0xff] }
 0x286   : > { %1666 = vst [vmem:[#allocation2 + $0x4b8] sm:$0xff] %v1506_v44  ;;  %v544_v44 = vld [vmem:[#allocation2 + $0x230] sm:$0xff] }
 0x288   : > { %v1184_v48 = vpop.f32.mrf.mxu2  ;;  %v1273_v49 = vpop.f32.mrf.mxu3 }
 0x289   : > { %v1504_v50 = vadd.f32 %v1184_v48, %v512_v45  ;;  %v1505_v51 = vadd.f32 %v1273_v49, %v513_v31  ;;  %v1097_v52 = vpop.f32.mrf.mxu1  ;;  %v1364_v53 = vpop.f32.mrf.mxu0 }
 0x28a   : > { %v1508_v54 = vadd.f32 %v1097_v52, %v516_v46  ;;  %v1511_v10 = vadd.f32 %v1364_v53, %v519_v47  ;;  %v542_v52 = vld [vmem:[#allocation2 + $0x148] sm:$0xff]  ;;  %v543_v53 = vld [vmem:[#allocation2 + $0xd0] sm:$0xff] }
 0x28b   : > { %1664 = vst [vmem:[#allocation2 + $0x268] sm:$0xff] %v1504_v50 }
 0x28c   : > { %1665 = vst [vmem:[#allocation2 + $0x180] sm:$0xff] %v1505_v51 }
 0x28d   : > { %1668 = vst [vmem:[#allocation2 + $0x1e8] sm:$0xff] %v1508_v54  ;;  %v546_v54 = vld [vmem:[#allocation2 + $0x370] sm:$0xff] }
 0x28e   : > { %1671 = vst [vmem:[#allocation2 + $0x170] sm:$0xff] %v1511_v10  ;;  %v549_v10 = vld [vmem:[#allocation2 + $0x1a0] sm:$0xff] }
 0x290   : > { %v1186_v58 = vpop.f32.mrf.mxu2  ;;  %v1275_v59 = vpop.f32.mrf.mxu3 }
 0x291   : > { %v1509_v60 = vadd.f32 %v1186_v58, %v517_v55  ;;  %v1510_v61 = vadd.f32 %v1275_v59, %v518_v42  ;;  %v1100_v16 = vpop.f32.mrf.mxu1  ;;  %v1367_v62 = vpop.f32.mrf.mxu0 }
 0x292   : > { %v1513_v12 = vadd.f32 %v1100_v16, %v521_v56  ;;  %v1516_v63 = vadd.f32 %v1367_v62, %v524_v57  ;;  %v547_v16 = vld [vmem:[#allocation2 + $0xc0] sm:$0xff]  ;;  %v548_v62 = vld [vmem:[#allocation2 + $0x110] sm:$0xff] }
 0x293   : > { %1669 = vst [vmem:[#allocation2 + $0x2f0] sm:$0xff] %v1509_v60 }
 0x294   : > { %1670 = vst [vmem:[#allocation2 + $0x3f0] sm:$0xff] %v1510_v61 }
 0x295   : > { %1673 = vst [vmem:[#allocation2 + $0x1b8] sm:$0xff] %v1513_v12 }
 0x296   : > { %1676 = vst [vmem:[#allocation2 + $0x248] sm:$0xff] %v1516_v63 }
 0x298   : > { %v1189_v3 = vpop.f32.mrf.mxu2  ;;  %v1278_v4 = vpop.f32.mrf.mxu3 }
 0x299   : > { %v1514_v5 = vadd.f32 %v1189_v3, %v522_v0  ;;  %v1515_v9 = vadd.f32 %v1278_v4, %v523_v1  ;;  %v1102_v13 = vpop.f32.mrf.mxu1  ;;  %v1369_v14 = vpop.f32.mrf.mxu0 }
 0x29a   : > { %v1518_v17 = vadd.f32 %v1102_v13, %v526_v2  ;;  %v1521_v29 = vadd.f32 %v1369_v14, %v529_v7 }
 0x29b   : > { %1674 = vst [vmem:[#allocation2 + $0xf0] sm:$0xff] %v1514_v5 }
 0x29c   : > { %1675 = vst [vmem:[#allocation2 + $0x238] sm:$0xff] %v1515_v9 }
 0x29d   : > { %1678 = vst [vmem:[#allocation2 + $0x498] sm:$0xff] %v1518_v17 }
 0x29e   : > { %1681 = vst [vmem:[#allocation2 + $0x2d8] sm:$0xff] %v1521_v29 }
 0x2a0   : > { %v1191_v15 = vpop.f32.mrf.mxu2  ;;  %v1280_v20 = vpop.f32.mrf.mxu3 }
 0x2a1   : > { %v1519_v21 = vadd.f32 %v1191_v15, %v527_v18  ;;  %v1520_v22 = vadd.f32 %v1280_v20, %v528_v19  ;;  %v1105_v23 = vpop.f32.mrf.mxu1  ;;  %v1372_v24 = vpop.f32.mrf.mxu0 }
 0x2a2   : > { %v1523_v25 = vadd.f32 %v1105_v23, %v531_v32  ;;  %v1526_v26 = vadd.f32 %v1372_v24, %v534_v41 }
 0x2a3   : > { %1679 = vst [vmem:[#allocation2 + $0x240] sm:$0xff] %v1519_v21 }
 0x2a4   : > { %1680 = vst [vmem:[#allocation2 + $0x100] sm:$0xff] %v1520_v22 }
 0x2a5   : > { %1683 = vst [vmem:[#allocation2 + $0x30] sm:$0xff] %v1523_v25 }
 0x2a6   : > { %1686 = vst [vmem:[#allocation2 + $0x468] sm:$0xff] %v1526_v26 }
 0x2a8   : > { %v1194_v11 = vpop.f32.mrf.mxu2  ;;  %v1283_v34 = vpop.f32.mrf.mxu3 }
 0x2a9   : > { %v1524_v35 = vadd.f32 %v1194_v11, %v532_v6  ;;  %v1525_v36 = vadd.f32 %v1283_v34, %v533_v27  ;;  %v1107_v37 = vpop.f32.mrf.mxu1  ;;  %v1374_v30 = vpop.f32.mrf.mxu0 }
 0x2aa   : > { %v1528_v38 = vadd.f32 %v1107_v37, %v536_v28  ;;  %v1531_v39 = vadd.f32 %v1374_v30, %v539_v33 }
 0x2ab   : > { %1684 = vst [vmem:[#allocation2 + $0x2b8] sm:$0xff] %v1524_v35 }
 0x2ac   : > { %1685 = vst [vmem:[#allocation2 + $0x1c0] sm:$0xff] %v1525_v36 }
 0x2ad   : > { %1688 = vst [vmem:[#allocation2 + $0x58] sm:$0xff] %v1528_v38 }
 0x2ae   : > { %1691 = vst [vmem:[#allocation2 + $0x3e8] sm:$0xff] %v1531_v39 }
 0x2b0   : > { %v1196_v45 = vpop.f32.mrf.mxu2  ;;  %v1285_v31 = vpop.f32.mrf.mxu3 }
 0x2b1   : > { %v1529_v46 = vadd.f32 %v1196_v45, %v537_v40  ;;  %v1530_v47 = vadd.f32 %v1285_v31, %v538_v43  ;;  %v1110_v48 = vpop.f32.mrf.mxu1  ;;  %v1377_v49 = vpop.f32.mrf.mxu0 }
 0x2b2   : > { %v1533_v50 = vadd.f32 %v1110_v48, %v541_v8  ;;  %v1536_v51 = vadd.f32 %v1377_v49, %v544_v44 }
 0x2b3   : > { %1689 = vst [vmem:[#allocation2 + $0x3d0] sm:$0xff] %v1529_v46 }
 0x2b4   : > { %1690 = vst [vmem:[#allocation2 + $0x340] sm:$0xff] %v1530_v47 }
 0x2b5   : > { %1693 = vst [vmem:[#allocation2 + $0x470] sm:$0xff] %v1533_v50 }
 0x2b6   : > { %1696 = vst [vmem:[#allocation2 + $0x230] sm:$0xff] %v1536_v51 }
 0x2b8   : > { %v1199_v55 = vpop.f32.mrf.mxu2  ;;  %v1288_v42 = vpop.f32.mrf.mxu3 }
 0x2b9   : > { %v1534_v56 = vadd.f32 %v1199_v55, %v542_v52  ;;  %v1535_v57 = vadd.f32 %v1288_v42, %v543_v53  ;;  %v1112_v58 = vpop.f32.mrf.mxu1  ;;  %v1379_v59 = vpop.f32.mrf.mxu0 }
 0x2ba   : > { %v1538_v60 = vadd.f32 %v1112_v58, %v546_v54  ;;  %v1541_v61 = vadd.f32 %v1379_v59, %v549_v10 }
 0x2bb   : > { %1694 = vst [vmem:[#allocation2 + $0x148] sm:$0xff] %v1534_v56 }
 0x2bc   : > { %1695 = vst [vmem:[#allocation2 + $0xd0] sm:$0xff] %v1535_v57 }
 0x2bd   : > { %1698 = vst [vmem:[#allocation2 + $0x370] sm:$0xff] %v1538_v60 }
 0x2be   : > { %1701 = vst [vmem:[#allocation2 + $0x1a0] sm:$0xff] %v1541_v61 }
 0x2c0   : > { %v1201_v12 = vpop.f32.mrf.mxu2  ;;  %v1290_v63 = vpop.f32.mrf.mxu3  ;;  %1705 = sbr.rel (%p2695_p1) target bundleno = 1086 (0x43e), region = 48 }
 0x2c1   : > { %v1539_v0 = vadd.f32 %v1201_v12, %v547_v16  ;;  %v1540_v1 = vadd.f32 %v1290_v63, %v548_v62 }
 0x2c3   : > { %1699 = vst [vmem:[#allocation2 + $0xc0] sm:$0xff] %v1539_v0 }
 0x2c4   : > { %1700 = vst [vmem:[#allocation2 + $0x110] sm:$0xff] %v1540_v1 }
 0x2c5   : > { %v1719_v2 = vld [vmem:[#allocation2 + $0x440] sm:$0xff]  ;;  %v3125_v3 = vmov 0   ;;  %v1721_v4 = vld [vmem:[#allocation2 + $0x108] sm:$0xff]  ;;  %v1720_v5 = vld [vmem:[#allocation2 + $0x378] sm:$0xff]  ;;  %vm1734_vm0 = vcmask 1014784   ;;  %vm1760_vm1 = vcmask 982016  }
 0x2c6   : > { %v1706_v7 = vld [vmem:[%s3813_s29] sm:$0xff]  ;;  %1728 = vrot.lane.b32.xlu1 %v1719_v2, %s3124_s11  ;;  %2929 = vset.pattern.permute.xlu0 %v3125_v3  ;;  %v1718_v9 = vld [vmem:[#allocation2 + $0x328] sm:$0xff]  ;;  %v1744_v13 = vld [vmem:[#allocation2 + $0x310] sm:$0xff]  ;;  %vm1786_vm2 = vcmask 637952   ;;  %vm1812_vm3 = vcmask 621568   ;;  %vm1838_vm4 = vcmask 605184  }
 0x2c7   : > { %1709 = vperm.xlu0 %2929, %v1706_v7   ;;  %1732 = vrot.lane.b32.xlu2 %v1721_v4, %s3124_s11  ;;  %v1746_v14 = vld [vmem:[#allocation2 + $0x308] sm:$0xff]  ;;  %v1745_v17 = vld [vmem:[#allocation2 + $0x4f0] sm:$0xff]  ;;  %v1771_v18 = vld [vmem:[#allocation2 + $0xd8] sm:$0xff]  ;;  %vm1864_vm5 = vcmask 433152   ;;  %vm1890_vm6 = vcmask 424960   ;;  %s3143_s29 = smov 110  }
 0x2c8   : > { %v1747_v29 = vld [vmem:[#allocation2 + $0x2a8] sm:$0xff]  ;;  %v1770_v19 = vld [vmem:[#allocation2 + $0x60] sm:$0xff]  ;;  %v1798_v22 = vld [vmem:[#allocation2 + $0x4f8] sm:$0xff]  ;;  %vm1916_vm7 = vcmask 416768   ;;  %vm1942_vm8 = vcmask 261120   ;;  %vm1968_vm9 = vcmask 244736  }
 0x2c9   : > { %v1772_v32 = vld [vmem:[#allocation2 + $0x388] sm:$0xff]  ;;  %v1796_v41 = vld [vmem:[#allocation2 + $0xa0] sm:$0xff]  ;;  %v1824_v24 = vld [vmem:[#allocation2 + $0xb8] sm:$0xff]  ;;  %vm1994_vm10 = vcmask 236544   ;;  %vm2020_vm11 = vcmask 228352   ;;  %vm2046_vm12 = vcmask 220160  }
 0x2ca   : > { %v1773_v15 = vld [vmem:[#allocation2 + $0x160] sm:$0xff]  ;;  %v1823_v25 = vld [vmem:[#allocation2 + $0x390] sm:$0xff]  ;;  %v1848_v27 = vld [vmem:[#allocation2 + $0x1a8] sm:$0xff]  ;;  %vm2072_vm13 = vcmask 211968   ;;  %vm2098_vm14 = vcmask 195584   ;;  %vm2124_vm15 = vcmask 39936  }
 0x2cb   : > { %v1797_v20 = vld [vmem:[#allocation2 + $0x360] sm:$0xff]  ;;  %v1825_v26 = vld [vmem:[#allocation2 + $0x270] sm:$0xff]  ;;  %v1850_v28 = vld [vmem:[#allocation2 + $0x38] sm:$0xff] }
 0x2cc   : > { %v1799_v21 = vld [vmem:[#allocation2 + $0x380] sm:$0xff]  ;;  %v1851_v11 = vld [vmem:[#allocation2 + $0x3f8] sm:$0xff]  ;;  %v1875_v34 = vld [vmem:[#allocation2 + $0x188] sm:$0xff] }
 0x2cd   : > { %v1822_v23 = vld [vmem:[#allocation2 + $0x4a0] sm:$0xff]  ;;  %v1877_v35 = vld [vmem:[#allocation2 + $0x78] sm:$0xff]  ;;  %v1876_v36 = vld [vmem:[#allocation2 + $0x210] sm:$0xff] }
 0x2ce   : > { %1730 = vrot.lane.b32.xlu1 %v1720_v5, %s3124_s11  ;;  %v1849_v6 = vld [vmem:[#allocation2 + $0x2a0] sm:$0xff]  ;;  %v1900_v37 = vld [vmem:[#allocation2 + $0x3c8] sm:$0xff]  ;;  %v1902_v30 = vld [vmem:[#allocation2 + $0x3b8] sm:$0xff] }
 0x2cf   : > { %1726 = vrot.lane.b32.xlu0 %v1718_v9, %s3124_s11  ;;  %1752 = vrot.lane.b32.xlu2 %v1744_v13, %s3126_s4  ;;  %v1874_v33 = vld [vmem:[#allocation2 + $0x320] sm:$0xff]  ;;  %v1903_v39 = vld [vmem:[#allocation2 + $0x8] sm:$0xff]  ;;  %v1928_v8 = vld [vmem:[#allocation2 + $0x218] sm:$0xff]  ;;  %s3144_s11 = smov 108  }
 0x2d0   : > { %v1901_v38 = vld [vmem:[#allocation2 + $0x280] sm:$0xff]  ;;  %v1927_v40 = vld [vmem:[#allocation2 + $0x4a8] sm:$0xff]  ;;  %v1952_v45 = vld [vmem:[#allocation2 + $0x10] sm:$0xff] }
 0x2d1   : > { %v1926_v43 = vld [vmem:[#allocation2 + $0x300] sm:$0xff]  ;;  %v1929_v31 = vld [vmem:[#allocation2 + $0x168] sm:$0xff]  ;;  %v1953_v46 = vld [vmem:[#allocation2 + $0x1f8] sm:$0xff] }
 0x2d2   : > { %v1955_v48 = vld [vmem:[#allocation2 + $0x258] sm:$0xff]  ;;  %v1954_v49 = vld [vmem:[#allocation2 + $0x2e8] sm:$0xff]  ;;  %v1978_v50 = vld [vmem:[#allocation2 + $0x2c0] sm:$0xff] }
 0x2d3   : > { %v1980_v52 = vld [vmem:[#allocation2 + $0xf8] sm:$0xff]  ;;  %v1979_v53 = vld [vmem:[#allocation2 + $0x140] sm:$0xff]  ;;  %v1981_v54 = vld [vmem:[#allocation2 + $0x70] sm:$0xff] }
 0x2d4   : > { %v2005_v56 = vld [vmem:[#allocation2 + $0x350] sm:$0xff]  ;;  %v2004_v57 = vld [vmem:[#allocation2 + $0x40] sm:$0xff]  ;;  %v1714_v59 = vld [vmem:[#allocation2 + $0x4d8] sm:$0xff] }
 0x2d5   : > { %v1713_v58 = vld [vmem:[#allocation2 + $0x3b0] sm:$0xff]  ;;  %v2030_v13 = vld [vmem:[#allocation2 + $0x3a0] sm:$0xff] }
 0x2d6   : > { %1756 = vrot.lane.b32.xlu1 %v1746_v14, %s3126_s4  ;;  %v2006_v60 = vld [vmem:[#allocation2 + $0x250] sm:$0xff]  ;;  %v2007_v14 = vld [vmem:[#allocation2 + $0x1e0] sm:$0xff] }
 0x2d7   : > { %1754 = vrot.lane.b32.xlu0 %v1745_v17, %s3126_s4  ;;  %1758 = vrot.lane.b32.xlu2 %v1747_v29, %s3126_s4  ;;  %v1712_v61 = vld [vmem:[#allocation2 + $0x2b0] sm:$0xff]  ;;  %v2031_v17 = vld [vmem:[#allocation2 + $0x80] sm:$0xff]  ;;  %s3145_s4 = smov 106  }
 0x2de   : > { %1780 = vrot.lane.b32.xlu1 %v1771_v18, %s3127_s18 }
 0x2df   : > { %1778 = vrot.lane.b32.xlu0 %v1770_v19, %s3127_s18  ;;  %1782 = vrot.lane.b32.xlu2 %v1772_v32, %s3127_s18 }
 0x2e6   : > { %1804 = vrot.lane.b32.xlu1 %v1796_v41, %s3128_s5 }
 0x2e7   : > { %1784 = vrot.lane.b32.xlu0 %v1773_v15, %s3127_s18  ;;  %1806 = vrot.lane.b32.xlu2 %v1797_v20, %s3128_s5  ;;  %s3146_s18 = smov 64  }
 0x2ee   : > { %1810 = vrot.lane.b32.xlu1 %v1799_v21, %s3128_s5 }
 0x2ef   : > { %1808 = vrot.lane.b32.xlu0 %v1798_v22, %s3128_s5  ;;  %1830 = vrot.lane.b32.xlu2 %v1822_v23, %s3129_s7  ;;  %v2033_v23 = vld [vmem:[#allocation2 + $0x228] sm:$0xff]  ;;  %s3147_s5 = smov 60  }
 0x2f6   : > { %1834 = vrot.lane.b32.xlu1 %v1824_v24, %s3129_s7  ;;  %v2032_v24 = vld [vmem:[#allocation2 + $0x400] sm:$0xff] }
 0x2f7   : > { %1832 = vrot.lane.b32.xlu0 %v1823_v25, %s3129_s7  ;;  %1836 = vrot.lane.b32.xlu2 %v1825_v26, %s3129_s7  ;;  %v2056_v25 = vld [vmem:[#allocation2 + $0x288] sm:$0xff]  ;;  %s3148_s7 = smov 56  }
 0x2fe   : > { %1858 = vrot.lane.b32.xlu1 %v1849_v6, %s3130_s23 }
 0x2ff   : > { %1856 = vrot.lane.b32.xlu0 %v1848_v27, %s3130_s23  ;;  %1860 = vrot.lane.b32.xlu2 %v1850_v28, %s3130_s23 }
 0x306   : > { %1882 = vrot.lane.b32.xlu1 %v1874_v33, %s3131_s6 }
 0x307   : > { %1862 = vrot.lane.b32.xlu0 %v1851_v11, %s3130_s23  ;;  %1884 = vrot.lane.b32.xlu2 %v1875_v34, %s3131_s6 }
 0x30e   : > { %1888 = vrot.lane.b32.xlu1 %v1877_v35, %s3131_s6  ;;  %v2058_v35 = vld [vmem:[#allocation2 + $0x4b0] sm:$0xff] }
 0x30f   : > { %1886 = vrot.lane.b32.xlu0 %v1876_v36, %s3131_s6  ;;  %1908 = vrot.lane.b32.xlu2 %v1900_v37, %s3132_s30  ;;  %v2057_v36 = vld [vmem:[#allocation2 + $0x460] sm:$0xff]  ;;  %v2059_v37 = vld [vmem:[#allocation2 + $0x1d8] sm:$0xff] }
 0x316   : > { %1912 = vrot.lane.b32.xlu1 %v1902_v30, %s3132_s30 }
 0x317   : > { %1910 = vrot.lane.b32.xlu0 %v1901_v38, %s3132_s30  ;;  %1914 = vrot.lane.b32.xlu2 %v1903_v39, %s3132_s30 }
 0x31e   : > { %1936 = vrot.lane.b32.xlu1 %v1927_v40, %s3133_s8 }
 0x31f   : > { %1934 = vrot.lane.b32.xlu0 %v1926_v43, %s3133_s8  ;;  %1938 = vrot.lane.b32.xlu2 %v1928_v8, %s3133_s8 }
 0x321   : > { %v1733_v44 = vpop.permute.xlu2 %1732 }
 0x326   : > { %1960 = vrot.lane.b32.xlu1 %v1952_v45, %s3134_s28  ;;  %v2083_v45 = vld [vmem:[#allocation2 + $0x1b0] sm:$0xff] }
 0x327   : > { %1940 = vrot.lane.b32.xlu0 %v1929_v31, %s3133_s8  ;;  %1962 = vrot.lane.b32.xlu2 %v1953_v46, %s3134_s28  ;;  %v2082_v31 = vld [vmem:[#allocation2 + $0x50] sm:$0xff] }
 0x328   : > { %v2084_v46 = vld [vmem:[#allocation2 + $0x150] sm:$0xff] }
 0x329   : > { %v1753_v47 = vpop.permute.xlu2 %1752 }
 0x32e   : > { %1966 = vrot.lane.b32.xlu1 %v1955_v48, %s3134_s28 }
 0x32f   : > { %1964 = vrot.lane.b32.xlu0 %v1954_v49, %s3134_s28  ;;  %1986 = vrot.lane.b32.xlu2 %v1978_v50, %s3135_s15 }
 0x331   : > { %v1759_v51 = vpop.permute.xlu2 %1758 }
 0x336   : > { %1990 = vrot.lane.b32.xlu1 %v1980_v52, %s3135_s15 }
 0x337   : > { %1988 = vrot.lane.b32.xlu0 %v1979_v53, %s3135_s15  ;;  %1992 = vrot.lane.b32.xlu2 %v1981_v54, %s3135_s15  ;;  %v2108_v54 = vld [vmem:[#allocation2 + $0x418] sm:$0xff] }
 0x338   : > { %v1729_v10 = vpop.permute.xlu1 %1728 }
 0x339   : > { %v1710_v55 = vpop.permute.xlu0 %1709  ;;  %v3677_v42 = vpop.permute.xlu2 %1782 }
 0x33a   : > { %v1716_v16 = vadd.f32 %v1713_v58, %v1710_v55  ;;  %v1717_v62 = vadd.f32 %v1714_v59, %v1710_v55  ;;  %v1715_v63 = vadd.f32 %v1712_v61, %v1710_v55  ;;  %v2109_v55 = vld [vmem:[#allocation2 + $0x338] sm:$0xff] }
 0x33e   : > { %2014 = vrot.lane.b32.xlu1 %v2005_v56, %s3136_s24 }
 0x33f   : > { %2012 = vrot.lane.b32.xlu0 %v2004_v57, %s3136_s24  ;;  %2016 = vrot.lane.b32.xlu2 %v2006_v60, %s3136_s24 }
 0x340   : > { %v1731_v12 = vpop.permute.xlu1 %1730 }
 0x341   : > { %v1736_v0 = vsel %vm1734_vm0, %v1729_v10, %v1731_v12  ;;  %v1737_v1 = vsel %vm1734_vm0, %v1731_v12, %v1733_v44  ;;  %v1727_v2 = vpop.permute.xlu0 %1726  ;;  %v1807_v5 = vpop.permute.xlu2 %1806  ;;  %v2111_v12 = vld [vmem:[#allocation2 + $0x158] sm:$0xff] }
 0x342   : > { %v1742_v7 = vadd.f32 %v1736_v0, %v1716_v16  ;;  %v1743_v3 = vadd.f32 %v1737_v1, %v1717_v62  ;;  %v1735_v4 = vsel %vm1734_vm0, %v1727_v2, %v1729_v10  ;;  %v2085_v10 = vld [vmem:[#allocation2 + $0x4e8] sm:$0xff]  ;;  %vm2150_vm0 = vcmask 31744  }
 0x343   : > { %v1741_v9 = vadd.f32 %v1735_v4, %v1715_v63  ;;  %v2110_v63 = vld [vmem:[#allocation2 + $0x358] sm:$0xff]  ;;  %v2134_v0 = vld [vmem:[#allocation2 + $0x448] sm:$0xff] }
 0x346   : > { %2038 = vrot.lane.b32.xlu1 %v2030_v13, %s3137_s10  ;;  %v2136_v13 = vld [vmem:[#allocation2 + $0x2d0] sm:$0xff] }
 0x347   : > { %2018 = vrot.lane.b32.xlu0 %v2007_v14, %s3136_s24  ;;  %2040 = vrot.lane.b32.xlu2 %v2031_v17, %s3137_s10  ;;  %v2135_v14 = vld [vmem:[#allocation2] sm:$0xff]  ;;  %v2137_v17 = vld [vmem:[#allocation2 + $0x278] sm:$0xff] }
 0x348   : > { %v1757_v29 = vpop.permute.xlu1 %1756 }
 0x349   : > { %v1763_v18 = vsel %vm1760_vm1, %v1757_v29, %v1759_v51  ;;  %v1755_v19 = vpop.permute.xlu0 %1754  ;;  %v1831_v20 = vpop.permute.xlu2 %1830 }
 0x34a   : > { %v1769_v32 = vadd.f32 %v1763_v18, %v1743_v3  ;;  %v1761_v41 = vsel %vm1760_vm1, %v1753_v47, %v1755_v19  ;;  %v1762_v15 = vsel %vm1760_vm1, %v1755_v19, %v1757_v29  ;;  %vm2176_vm1 = vcmask 23552  }
 0x34b   : > { %v1767_v21 = vadd.f32 %v1761_v41, %v1741_v9  ;;  %v1768_v22 = vadd.f32 %v1762_v15, %v1742_v7 }
 0x34e   : > { %2044 = vrot.lane.b32.xlu1 %v2033_v23, %s3137_s10  ;;  %v2162_v23 = vld [vmem:[#allocation2 + $0x438] sm:$0xff] }
 0x34f   : > { %2042 = vrot.lane.b32.xlu0 %v2032_v24, %s3137_s10  ;;  %2064 = vrot.lane.b32.xlu2 %v2056_v25, %s3138_s3 }
 0x350   : > { %v1781_v26 = vpop.permute.xlu1 %1780 }
 0x351   : > { %v1788_v6 = vsel %vm1786_vm2, %v1781_v26, %v3677_v42  ;;  %v1779_v27 = vpop.permute.xlu0 %1778  ;;  %v1837_v11 = vpop.permute.xlu2 %1836 }
 0x352   : > { %v1794_v28 = vadd.f32 %v1788_v6, %v1768_v22  ;;  %v1787_v33 = vsel %vm1786_vm2, %v1779_v27, %v1781_v26  ;;  %v2160_v22 = vld [vmem:[#allocation2 + $0x90] sm:$0xff] }
 0x353   : > { %v1793_v34 = vadd.f32 %v1787_v33, %v1767_v21  ;;  %v2161_v21 = vld [vmem:[#allocation2 + $0x138] sm:$0xff] }
 0x356   : > { %2068 = vrot.lane.b32.xlu1 %v2058_v35, %s3138_s3  ;;  %v2187_v35 = vld [vmem:[#allocation2 + $0x2f8] sm:$0xff] }
 0x357   : > { %2066 = vrot.lane.b32.xlu0 %v2057_v36, %s3138_s3  ;;  %2070 = vrot.lane.b32.xlu2 %v2059_v37, %s3138_s3 }
 0x358   : > { %v1805_v30 = vpop.permute.xlu1 %1804 }
 0x359   : > { %v1813_v38 = vsel %vm1812_vm3, %v1805_v30, %v1807_v5  ;;  %v1785_v39 = vpop.permute.xlu0 %1784  ;;  %v1861_v8 = vpop.permute.xlu2 %1860 }
 0x35a   : > { %v1819_v40 = vadd.f32 %v1813_v38, %v1793_v34  ;;  %v1789_v43 = vsel %vm1786_vm2, %v3677_v42, %v1785_v39  ;;  %v2163_v34 = vld [vmem:[#allocation2 + $0x2c8] sm:$0xff]  ;;  %vm2202_vm2 = vcmask 900096  }
 0x35b   : > { %v1795_v44 = vadd.f32 %v1789_v43, %v1769_v32 }
 0x35e   : > { %2092 = vrot.lane.b32.xlu1 %v2083_v45, %s3139_s19  ;;  %v2189_v45 = vld [vmem:[#allocation2 + $0x3c0] sm:$0xff] }
 0x35f   : > { %2090 = vrot.lane.b32.xlu0 %v2082_v31, %s3139_s19  ;;  %2094 = vrot.lane.b32.xlu2 %v2084_v46, %s3139_s19  ;;  %v2188_v31 = vld [vmem:[#allocation2 + $0x68] sm:$0xff]  ;;  %v2212_v46 = vld [vmem:[#allocation2 + $0x2e0] sm:$0xff] }
 0x360   : > { %v1811_v47 = vpop.permute.xlu1 %1810 }
 0x361   : > { %v1809_v48 = vpop.permute.xlu0 %1808  ;;  %v1885_v51 = vpop.permute.xlu2 %1884 }
 0x362   : > { %v1814_v49 = vsel %vm1812_vm3, %v1807_v5, %v1809_v48  ;;  %v1815_v50 = vsel %vm1812_vm3, %v1809_v48, %v1811_v47  ;;  %vm2228_vm3 = vcmask 883712  }
 0x363   : > { %v1820_v52 = vadd.f32 %v1814_v49, %v1794_v28  ;;  %v1821_v53 = vadd.f32 %v1815_v50, %v1795_v44 }
 0x366   : > { %2116 = vrot.lane.b32.xlu1 %v2108_v54, %s3140_s25  ;;  %v2214_v54 = vld [vmem:[#allocation2 + $0x1c8] sm:$0xff] }
 0x367   : > { %2096 = vrot.lane.b32.xlu0 %v2085_v10, %s3139_s19  ;;  %2118 = vrot.lane.b32.xlu2 %v2109_v55, %s3140_s25  ;;  %v2213_v10 = vld [vmem:[#allocation2 + $0x3a8] sm:$0xff]  ;;  %v2215_v55 = vld [vmem:[#allocation2 + $0x3d8] sm:$0xff] }
 0x368   : > { %v1835_v42 = vpop.permute.xlu1 %1834 }
 0x369   : > { %v1841_v56 = vsel %vm1838_vm4, %v1835_v42, %v1837_v11  ;;  %v1833_v57 = vpop.permute.xlu0 %1832  ;;  %v1909_v61 = vpop.permute.xlu2 %1908  ;;  %v2186_v11 = vld [vmem:[#allocation2 + $0x298] sm:$0xff] }
 0x36a   : > { %v1847_v58 = vadd.f32 %v1841_v56, %v1821_v53  ;;  %v1839_v59 = vsel %vm1838_vm4, %v1831_v20, %v1833_v57  ;;  %v1840_v60 = vsel %vm1838_vm4, %v1833_v57, %v1835_v42  ;;  %vm2254_vm4 = vcmask 867328  }
 0x36b   : > { %v1845_v16 = vadd.f32 %v1839_v59, %v1819_v40  ;;  %v1846_v62 = vadd.f32 %v1840_v60, %v1820_v52 }
 0x36e   : > { %2122 = vrot.lane.b32.xlu1 %v2111_v12, %s3140_s25  ;;  %v2240_v12 = vld [vmem:[#allocation2 + $0x410] sm:$0xff] }
 0x36f   : > { %2120 = vrot.lane.b32.xlu0 %v2110_v63, %s3140_s25  ;;  %2142 = vrot.lane.b32.xlu2 %v2134_v0, %s3141_s26 }
 0x370   : > { %v1859_v1 = vpop.permute.xlu1 %1858 }
 0x371   : > { %v1866_v2 = vsel %vm1864_vm5, %v1859_v1, %v1861_v8  ;;  %v1857_v7 = vpop.permute.xlu0 %1856  ;;  %v1915_v5 = vpop.permute.xlu2 %1914 }
 0x372   : > { %v1872_v3 = vadd.f32 %v1866_v2, %v1846_v62  ;;  %v1865_v4 = vsel %vm1864_vm5, %v1857_v7, %v1859_v1  ;;  %v2238_v62 = vld [vmem:[#allocation2 + $0xe8] sm:$0xff] }
 0x373   : > { %v1871_v9 = vadd.f32 %v1865_v4, %v1845_v16  ;;  %v2239_v16 = vld [vmem:[#allocation2 + $0x98] sm:$0xff] }
 0x376   : > { %2146 = vrot.lane.b32.xlu1 %v2136_v13, %s3141_s26  ;;  %v2265_v13 = vld [vmem:[#allocation2 + $0x290] sm:$0xff] }
 0x377   : > { %2144 = vrot.lane.b32.xlu0 %v2135_v14, %s3141_s26  ;;  %2148 = vrot.lane.b32.xlu2 %v2137_v17, %s3141_s26 }
 0x378   : > { %v1883_v29 = vpop.permute.xlu1 %1882 }
 0x379   : > { %v1891_v18 = vsel %vm1890_vm6, %v1883_v29, %v1885_v51  ;;  %v1863_v19 = vpop.permute.xlu0 %1862  ;;  %v1939_v15 = vpop.permute.xlu2 %1938 }
 0x37a   : > { %v1897_v32 = vadd.f32 %v1891_v18, %v1871_v9  ;;  %v1867_v41 = vsel %vm1864_vm5, %v1861_v8, %v1863_v19  ;;  %v2241_v9 = vld [vmem:[#allocation2 + $0xc8] sm:$0xff]  ;;  %vm2280_vm5 = vcmask 523264  }
 0x37b   : > { %v1873_v20 = vadd.f32 %v1867_v41, %v1847_v58 }
 0x37e   : > { %2170 = vrot.lane.b32.xlu1 %v2161_v21, %s3142_s27  ;;  %v2267_v21 = vld [vmem:[#allocation2 + $0x118] sm:$0xff] }
 0x37f   : > { %2168 = vrot.lane.b32.xlu0 %v2160_v22, %s3142_s27  ;;  %2172 = vrot.lane.b32.xlu2 %v2162_v23, %s3142_s27  ;;  %v2266_v22 = vld [vmem:[#allocation2 + $0x330] sm:$0xff]  ;;  %v2290_v23 = vld [vmem:[#allocation2 + $0x4c8] sm:$0xff] }
 0x380   : > { %v1889_v24 = vpop.permute.xlu1 %1888 }
 0x381   : > { %v1887_v25 = vpop.permute.xlu0 %1886  ;;  %v1963_v27 = vpop.permute.xlu2 %1962 }
 0x382   : > { %v1892_v26 = vsel %vm1890_vm6, %v1885_v51, %v1887_v25  ;;  %v1893_v6 = vsel %vm1890_vm6, %v1887_v25, %v1889_v24  ;;  %vm2306_vm6 = vcmask 490496  }
 0x383   : > { %v1898_v28 = vadd.f32 %v1892_v26, %v1872_v3  ;;  %v1899_v33 = vadd.f32 %v1893_v6, %v1873_v20 }
 0x386   : > { %2194 = vrot.lane.b32.xlu1 %v2186_v11, %s3143_s29  ;;  %v2292_v11 = vld [vmem:[#allocation2 + $0x1d0] sm:$0xff] }
 0x387   : > { %2174 = vrot.lane.b32.xlu0 %v2163_v34, %s3142_s27  ;;  %2196 = vrot.lane.b32.xlu2 %v2187_v35, %s3143_s29  ;;  %v2291_v34 = vld [vmem:[#allocation2 + $0x120] sm:$0xff]  ;;  %v2293_v35 = vld [vmem:[#allocation2 + $0x208] sm:$0xff] }
 0x388   : > { %v1913_v36 = vpop.permute.xlu1 %1912 }
 0x389   : > { %v1919_v37 = vsel %vm1916_vm7, %v1913_v36, %v1915_v5  ;;  %v1911_v30 = vpop.permute.xlu0 %1910  ;;  %v1987_v43 = vpop.permute.xlu2 %1986  ;;  %v2264_v5 = vld [vmem:[#allocation2 + $0x28] sm:$0xff] }
 0x38a   : > { %v1925_v38 = vadd.f32 %v1919_v37, %v1899_v33  ;;  %v1917_v39 = vsel %vm1916_vm7, %v1909_v61, %v1911_v30  ;;  %v1918_v40 = vsel %vm1916_vm7, %v1911_v30, %v1913_v36  ;;  %vm2332_vm7 = vcmask 457728  }
 0x38b   : > { %v1923_v8 = vadd.f32 %v1917_v39, %v1897_v32  ;;  %v1924_v44 = vadd.f32 %v1918_v40, %v1898_v28 }
 0x38e   : > { %2200 = vrot.lane.b32.xlu1 %v2189_v45, %s3143_s29  ;;  %v2318_v45 = vld [vmem:[#allocation2 + $0x180] sm:$0xff] }
 0x38f   : > { %2198 = vrot.lane.b32.xlu0 %v2188_v31, %s3143_s29  ;;  %2220 = vrot.lane.b32.xlu2 %v2212_v46, %s3144_s11 }
 0x390   : > { %v1937_v47 = vpop.permute.xlu1 %1936 }
 0x391   : > { %v1944_v48 = vsel %vm1942_vm8, %v1937_v47, %v1939_v15  ;;  %v1935_v49 = vpop.permute.xlu0 %1934  ;;  %v1993_v52 = vpop.permute.xlu2 %1992 }
 0x392   : > { %v1950_v50 = vadd.f32 %v1944_v48, %v1924_v44  ;;  %v1943_v51 = vsel %vm1942_vm8, %v1935_v49, %v1937_v47  ;;  %v2316_v44 = vld [vmem:[#allocation2 + $0x428] sm:$0xff] }
 0x393   : > { %v1949_v53 = vadd.f32 %v1943_v51, %v1923_v8  ;;  %v2317_v8 = vld [vmem:[#allocation2 + $0x268] sm:$0xff] }
 0x396   : > { %2224 = vrot.lane.b32.xlu1 %v2214_v54, %s3144_s11 }
 0x397   : > { %2222 = vrot.lane.b32.xlu0 %v2213_v10, %s3144_s11  ;;  %2226 = vrot.lane.b32.xlu2 %v2215_v55, %s3144_s11 }
 0x398   : > { %v1961_v42 = vpop.permute.xlu1 %1960 }
 0x399   : > { %v1969_v56 = vsel %vm1968_vm9, %v1961_v42, %v1963_v27  ;;  %v1941_v57 = vpop.permute.xlu0 %1940  ;;  %v2017_v60 = vpop.permute.xlu2 %2016 }
 0x39a   : > { %v1975_v58 = vadd.f32 %v1969_v56, %v1949_v53  ;;  %v1945_v59 = vsel %vm1942_vm8, %v1939_v15, %v1941_v57 }
 0x39b   : > { %v1951_v61 = vadd.f32 %v1945_v59, %v1925_v38 }
 0x39e   : > { %2248 = vrot.lane.b32.xlu1 %v2239_v16, %s3145_s4 }
 0x39f   : > { %2246 = vrot.lane.b32.xlu0 %v2238_v62, %s3145_s4  ;;  %2250 = vrot.lane.b32.xlu2 %v2240_v12, %s3145_s4 }
 0x3a0   : > { %v1967_v63 = vpop.permute.xlu1 %1966 }
 0x3a1   : > { %v1965_v0 = vpop.permute.xlu0 %1964  ;;  %v2041_v7 = vpop.permute.xlu2 %2040 }
 0x3a2   : > { %v1970_v1 = vsel %vm1968_vm9, %v1963_v27, %v1965_v0  ;;  %v1971_v2 = vsel %vm1968_vm9, %v1965_v0, %v1967_v63 }
 0x3a3   : > { %v1976_v3 = vadd.f32 %v1970_v1, %v1950_v50  ;;  %v1977_v4 = vadd.f32 %v1971_v2, %v1951_v61 }
 0x3a6   : > { %2272 = vrot.lane.b32.xlu1 %v2264_v5, %s3146_s18 }
 0x3a7   : > { %2252 = vrot.lane.b32.xlu0 %v2241_v9, %s3145_s4  ;;  %2274 = vrot.lane.b32.xlu2 %v2265_v13, %s3146_s18 }
 0x3a8   : > { %v1991_v14 = vpop.permute.xlu1 %1990 }
 0x3a9   : > { %v1997_v17 = vsel %vm1994_vm10, %v1991_v14, %v1993_v52  ;;  %v1989_v29 = vpop.permute.xlu0 %1988  ;;  %v2065_v41 = vpop.permute.xlu2 %2064  ;;  %v2319_v52 = vld [vmem:[#allocation2 + $0x4b8] sm:$0xff] }
 0x3aa   : > { %v2003_v18 = vadd.f32 %v1997_v17, %v1977_v4  ;;  %v1995_v19 = vsel %vm1994_vm10, %v1987_v43, %v1989_v29  ;;  %v1996_v32 = vsel %vm1994_vm10, %v1989_v29, %v1991_v14 }
 0x3ab   : > { %v2001_v15 = vadd.f32 %v1995_v19, %v1975_v58  ;;  %v2002_v20 = vadd.f32 %v1996_v32, %v1976_v3 }
 0x3ae   : > { %2278 = vrot.lane.b32.xlu1 %v2267_v21, %s3146_s18 }
 0x3af   : > { %2276 = vrot.lane.b32.xlu0 %v2266_v22, %s3146_s18  ;;  %2298 = vrot.lane.b32.xlu2 %v2290_v23, %s3147_s5 }
 0x3b0   : > { %v2015_v24 = vpop.permute.xlu1 %2014 }
 0x3b1   : > { %v2022_v25 = vsel %vm2020_vm11, %v2015_v24, %v2017_v60  ;;  %v2013_v26 = vpop.permute.xlu0 %2012  ;;  %v2071_v28 = vpop.permute.xlu2 %2070 }
 0x3b2   : > { %v2028_v6 = vadd.f32 %v2022_v25, %v2002_v20  ;;  %v2021_v27 = vsel %vm2020_vm11, %v2013_v26, %v2015_v24 }
 0x3b3   : > { %v2027_v33 = vadd.f32 %v2021_v27, %v2001_v15 }
 0x3b6   : > { %2302 = vrot.lane.b32.xlu1 %v2292_v11, %s3147_s5 }
 0x3b7   : > { %2300 = vrot.lane.b32.xlu0 %v2291_v34, %s3147_s5  ;;  %2304 = vrot.lane.b32.xlu2 %v2293_v35, %s3147_s5 }
 0x3b8   : > { %v2039_v36 = vpop.permute.xlu1 %2038 }
 0x3b9   : > { %v2047_v37 = vsel %vm2046_vm12, %v2039_v36, %v2041_v7  ;;  %v2019_v30 = vpop.permute.xlu0 %2018  ;;  %v2095_v40 = vpop.permute.xlu2 %2094 }
 0x3ba   : > { %v2053_v38 = vadd.f32 %v2047_v37, %v2027_v33  ;;  %v2023_v39 = vsel %vm2020_vm11, %v2017_v60, %v2019_v30 }
 0x3bb   : > { %v2029_v43 = vadd.f32 %v2023_v39, %v2003_v18 }
 0x3be   : > { %2326 = vrot.lane.b32.xlu1 %v2317_v8, %s3148_s7 }
 0x3bf   : > { %2324 = vrot.lane.b32.xlu0 %v2316_v44, %s3148_s7  ;;  %2328 = vrot.lane.b32.xlu2 %v2318_v45, %s3148_s7 }
 0x3c0   : > { %v2045_v31 = vpop.permute.xlu1 %2044 }
 0x3c1   : > { %v2043_v46 = vpop.permute.xlu0 %2042  ;;  %v2119_v49 = vpop.permute.xlu2 %2118 }
 0x3c2   : > { %v2048_v47 = vsel %vm2046_vm12, %v2041_v7, %v2043_v46  ;;  %v2049_v48 = vsel %vm2046_vm12, %v2043_v46, %v2045_v31 }
 0x3c3   : > { %v2054_v50 = vadd.f32 %v2048_v47, %v2028_v6  ;;  %v2055_v51 = vadd.f32 %v2049_v48, %v2029_v43 }
 0x3c7   : > { %2330 = vrot.lane.b32.xlu0 %v2319_v52, %s3148_s7 }
 0x3c8   : > { %v2069_v53 = vpop.permute.xlu1 %2068 }
 0x3c9   : > { %v2075_v54 = vsel %vm2072_vm13, %v2069_v53, %v2071_v28  ;;  %v2067_v10 = vpop.permute.xlu0 %2066  ;;  %v2143_v57 = vpop.permute.xlu2 %2142 }
 0x3ca   : > { %v2081_v55 = vadd.f32 %v2075_v54, %v2055_v51  ;;  %v2073_v42 = vsel %vm2072_vm13, %v2065_v41, %v2067_v10  ;;  %v2074_v56 = vsel %vm2072_vm13, %v2067_v10, %v2069_v53 }
 0x3cb   : > { %v2079_v58 = vadd.f32 %v2073_v42, %v2053_v38  ;;  %v2080_v59 = vadd.f32 %v2074_v56, %v2054_v50 }
 0x3d0   : > { %v2093_v60 = vpop.permute.xlu1 %2092 }
 0x3d1   : > { %v2100_v61 = vsel %vm2098_vm14, %v2093_v60, %v2095_v40  ;;  %v2091_v16 = vpop.permute.xlu0 %2090  ;;  %v2149_v0 = vpop.permute.xlu2 %2148 }
 0x3d2   : > { %v2106_v62 = vadd.f32 %v2100_v61, %v2080_v59  ;;  %v2099_v12 = vsel %vm2098_vm14, %v2091_v16, %v2093_v60 }
 0x3d3   : > { %v2105_v63 = vadd.f32 %v2099_v12, %v2079_v58 }
 0x3d8   : > { %v2117_v1 = vpop.permute.xlu1 %2116 }
 0x3d9   : > { %v2125_v2 = vsel %vm2124_vm15, %v2117_v1, %v2119_v49  ;;  %v2097_v7 = vpop.permute.xlu0 %2096  ;;  %v2173_v9 = vpop.permute.xlu2 %2172 }
 0x3da   : > { %v2131_v3 = vadd.f32 %v2125_v2, %v2105_v63  ;;  %v2101_v4 = vsel %vm2098_vm14, %v2095_v40, %v2097_v7 }
 0x3db   : > { %v2107_v5 = vadd.f32 %v2101_v4, %v2081_v55 }
 0x3e0   : > { %v2123_v13 = vpop.permute.xlu1 %2122 }
 0x3e1   : > { %v2121_v14 = vpop.permute.xlu0 %2120  ;;  %v2197_v41 = vpop.permute.xlu2 %2196 }
 0x3e2   : > { %v2126_v17 = vsel %vm2124_vm15, %v2119_v49, %v2121_v14  ;;  %v2127_v29 = vsel %vm2124_vm15, %v2121_v14, %v2123_v13 }
 0x3e3   : > { %v2132_v18 = vadd.f32 %v2126_v17, %v2106_v62  ;;  %v2133_v19 = vadd.f32 %v2127_v29, %v2107_v5 }
 0x3e8   : > { %v2147_v32 = vpop.permute.xlu1 %2146 }
 0x3e9   : > { %v2153_v15 = vsel %vm2150_vm0, %v2147_v32, %v2149_v0  ;;  %v2145_v20 = vpop.permute.xlu0 %2144  ;;  %v2221_v26 = vpop.permute.xlu2 %2220 }
 0x3ea   : > { %v2159_v21 = vadd.f32 %v2153_v15, %v2133_v19  ;;  %v2151_v22 = vsel %vm2150_vm0, %v2143_v57, %v2145_v20  ;;  %v2152_v44 = vsel %vm2150_vm0, %v2145_v20, %v2147_v32 }
 0x3eb   : > { %v2157_v23 = vadd.f32 %v2151_v22, %v2131_v3  ;;  %v2158_v46 = vadd.f32 %v2152_v44, %v2132_v18 }
 0x3f0   : > { %v2171_v24 = vpop.permute.xlu1 %2170 }
 0x3f1   : > { %v2169_v25 = vpop.permute.xlu0 %2168  ;;  %v2227_v28 = vpop.permute.xlu2 %2226  ;;  %v2178_v31 = vsel %vm2176_vm1, %v2171_v24, %v2173_v9 }
 0x3f2   : > { %v2177_v47 = vsel %vm2176_vm1, %v2169_v25, %v2171_v24  ;;  %v2184_v50 = vadd.f32 %v2178_v31, %v2158_v46 }
 0x3f3   : > { %v2183_v52 = vadd.f32 %v2177_v47, %v2157_v23 }
 0x3f8   : > { %v2195_v6 = vpop.permute.xlu1 %2194 }
 0x3f9   : > { %v2175_v27 = vpop.permute.xlu0 %2174  ;;  %v2251_v34 = vpop.permute.xlu2 %2250  ;;  %v2203_v51 = vsel %vm2202_vm2, %v2195_v6, %v2197_v41 }
 0x3fa   : > { %v2209_v42 = vadd.f32 %v2203_v51, %v2183_v52  ;;  %v2179_v16 = vsel %vm2176_vm1, %v2173_v9, %v2175_v27 }
 0x3fb   : > { %v2185_v4 = vadd.f32 %v2179_v16, %v2159_v21 }
 0x400   : > { %v2201_v33 = vpop.permute.xlu1 %2200 }
 0x401   : > { %v2199_v11 = vpop.permute.xlu0 %2198  ;;  %v2275_v30 = vpop.permute.xlu2 %2274 }
 0x402   : > { %v2204_v49 = vsel %vm2202_vm2, %v2197_v41, %v2199_v11  ;;  %v2205_v1 = vsel %vm2202_vm2, %v2199_v11, %v2201_v33 }
 0x403   : > { %v2210_v54 = vadd.f32 %v2204_v49, %v2184_v50  ;;  %v2211_v17 = vadd.f32 %v2205_v1, %v2185_v4 }
 0x408   : > { %v2225_v35 = vpop.permute.xlu1 %2224 }
 0x409   : > { %v2223_v36 = vpop.permute.xlu0 %2222  ;;  %v2299_v43 = vpop.permute.xlu2 %2298  ;;  %v2231_v13 = vsel %vm2228_vm3, %v2225_v35, %v2227_v28 }
 0x40a   : > { %v2230_v53 = vsel %vm2228_vm3, %v2223_v36, %v2225_v35  ;;  %v2229_v10 = vsel %vm2228_vm3, %v2221_v26, %v2223_v36  ;;  %v2237_v20 = vadd.f32 %v2231_v13, %v2211_v17 }
 0x40b   : > { %v2236_v58 = vadd.f32 %v2230_v53, %v2210_v54  ;;  %v2235_v60 = vadd.f32 %v2229_v10, %v2209_v42 }
 0x410   : > { %v2249_v37 = vpop.permute.xlu1 %2248 }
 0x411   : > { %v2247_v38 = vpop.permute.xlu0 %2246  ;;  %v2305_v48 = vpop.permute.xlu2 %2304  ;;  %v2256_v56 = vsel %vm2254_vm4, %v2249_v37, %v2251_v34 }
 0x412   : > { %v2255_v59 = vsel %vm2254_vm4, %v2247_v38, %v2249_v37  ;;  %v2262_v62 = vadd.f32 %v2256_v56, %v2236_v58 }
 0x413   : > { %v2261_v63 = vadd.f32 %v2255_v59, %v2235_v60 }
 0x418   : > { %v2273_v39 = vpop.permute.xlu1 %2272 }
 0x419   : > { %v2253_v40 = vpop.permute.xlu0 %2252  ;;  %v2281_v12 = vsel %vm2280_vm5, %v2273_v39, %v2275_v30  ;;  %v2329_v3 = vpop.permute.xlu2 %2328 }
 0x41a   : > { %v2287_v5 = vadd.f32 %v2281_v12, %v2261_v63  ;;  %v2257_v32 = vsel %vm2254_vm4, %v2251_v34, %v2253_v40 }
 0x41b   : > { %v2263_v23 = vadd.f32 %v2257_v32, %v2237_v20 }
 0x420   : > { %v2279_v8 = vpop.permute.xlu1 %2278 }
 0x421   : > { %v2277_v45 = vpop.permute.xlu0 %2276 }
 0x422   : > { %v2282_v61 = vsel %vm2280_vm5, %v2275_v30, %v2277_v45  ;;  %v2283_v21 = vsel %vm2280_vm5, %v2277_v45, %v2279_v8 }
 0x423   : > { %v2288_v2 = vadd.f32 %v2282_v61, %v2262_v62  ;;  %v2289_v25 = vadd.f32 %v2283_v21, %v2263_v23 }
 0x428   : > { %v2303_v55 = vpop.permute.xlu1 %2302 }
 0x429   : > { %v2301_v57 = vpop.permute.xlu0 %2300  ;;  %v2309_v24 = vsel %vm2306_vm6, %v2303_v55, %v2305_v48 }
 0x42a   : > { %v2308_v0 = vsel %vm2306_vm6, %v2301_v57, %v2303_v55  ;;  %v2307_v7 = vsel %vm2306_vm6, %v2299_v43, %v2301_v57  ;;  %v2315_v26 = vadd.f32 %v2309_v24, %v2289_v25 }
 0x42b   : > { %v2314_v9 = vadd.f32 %v2308_v0, %v2288_v2  ;;  %v2313_v29 = vadd.f32 %v2307_v7, %v2287_v5 }
 0x430   : > { %v2327_v14 = vpop.permute.xlu1 %2326 }
 0x431   : > { %v2334_v18 = vsel %vm2332_vm7, %v2327_v14, %v2329_v3  ;;  %v2325_v19 = vpop.permute.xlu0 %2324 }
 0x432   : > { %v2340_v41 = vadd.f32 %v2334_v18, %v2314_v9  ;;  %v2333_v15 = vsel %vm2332_vm7, %v2325_v19, %v2327_v14 }
 0x433   : > { %v2339_v22 = vadd.f32 %v2333_v15, %v2313_v29 }
 0x434   : > { %2343 = vst [vmem:[%s3313_s12 + $0x8] sm:$0xff] %v2340_v41 }
 0x435   : > { %2342 = vst [vmem:[%s3313_s12] sm:$0xff] %v2339_v22 }
 0x439   : > { %v2331_v6 = vpop.permute.xlu0 %2330 }
 0x43a   : > { %v2335_v27 = vsel %vm2332_vm7, %v2329_v3, %v2331_v6 }
 0x43b   : > { %v2341_v28 = vadd.f32 %v2335_v27, %v2315_v26 }
 0x43d   : > { %2344 = vst [vmem:[%s3313_s12 + $0x10] sm:$0xff] %v2341_v28 }
 0x43e PF: > { %s3814_s23 = sld [smem:[#allocation13_spill]]  ;;  %s2359_s8 = sshll.u32 %s3313_s12, 4  ;;  %s2360_s8 = int_to_ptr.vmem [resolvable:$true] %s2359_s8 }
 0x43f   : > { %s3816_s24 = sld [smem:[#allocation20_spill]]  ;;  %s2346_s19 = scalar_lea.sflag [#allocation5], %s222_s2 }
 0x444   : > { %s2785_s30 = smul.u32 24, %s3814_s23 }
 0x445   : > { %s3010_s12 = scalar_lea.hbm %s3816_s24, 48 }
 0x446   : > { %s2357_s10 = scalar_lea.hbm %s3816_s24, %s2785_s30 }
 0x447   : > { %s2361_s3 = sshll.u32 %s2357_s10, 4  ;;  %s2362_s3 = int_to_ptr.hbm [resolvable:$true] %s2361_s3 }
 0x448   : > { %s3004_s25 = sshra.s32 %s2362_s3, 4  ;;  %s3005_s25 = int_to_ptr.hbm [resolvable:$true] %s3004_s25 }
 0x449   : > { %s3006_s26 = scalar_lea.hbm %s3005_s25, 24  ;;  %p3011_p3 = scmp.lt.s32.totalorder %s3005_s25, %s3816_s24 }
 0x44a   : > { %p3007_p4 = scmp.ne.s32.totalorder %s3005_s25, %s3006_s26  ;;  %p3012_p5 = scmp.lt.s32.totalorder %s3010_s12, %s3006_s26 }
 0x44c   : > { %p3008_p0 = pnand %p3007_p4, %p3239_p6  ;;  %p3013_p7 = por %p3012_p5, %p3011_p3 }
 0x44e   : > { %p3009_p2 = pneg %p3008_p0 }
 0x450   : > { %p3014_p8 = pnand %p3013_p7, %p3009_p2 }
 0x452   : > { %3017 = shalt.err (!%p3014_p8)
}
 0x453   : > { %2792 = dma.vmem_to_hbm [thread:$0]  (%p3239_p6), %s2360_s8, 384, %s2362_s3, %s2346_s19  }
 0x454 PF: > { %s3817_s2 = sld [smem:[#allocation12_spill]]  ;;  %p2809_p9 = scmp.ge.s32.totalorder %s3116_s22, 2 }
 0x456   : > { %p2803_p12 = pnand %p2809_p9, %p3245_p10 }
 0x458   : > { %p2804_p13 = pneg %p2803_p12 }
 0x45a   : > { %s2373_s5 = sand.u32 1, %s3817_s2  }
 0x45b   : > { %s2374_s7 = scalar_lea.sflag [#allocation5], %s2373_s5 }
 0x45c   : > { %3071 = dma.done.wait (%p2804_p13), %s2374_s7, 384  }
 0x45d   : > { %3073 = vsyncadd (%p2804_p13), %s2374_s7, 4294966912  ;;  %s20_s22 = sadd.s32 1, %s3116_s22   ;;  %s3819_s23 = sld [smem:[#allocation16_spill]] }
 0x45e   : > { %p17_p11 = scmp.ge.s32.totalorder %s20_s22, 6   ;;  %s3820_s6 = sld [smem:[#allocation17_spill]] }
 0x45f   : > { %s3821_s12 = smov %s3080_s13  ;;  %s3822_s13 = smov %s3084_s14 }
 0x460   : > { %s3823_s14 = smov %s3284_s9  ;;  %s3824_s15 = smov %s3092_s16 }
 0x461   : > { %s3825_s16 = smov %s3096_s17  ;;  %s3826_s17 = smov %s3287_s1 }
 0x462   : > { %s3827_s18 = smov %s3108_s20  ;;  %s3828_s19 = smov %s3112_s21 }
 0x463   : > { %s3829_s20 = smov %s3819_s23  ;;  %19 = sbr.rel (!%p17_p11) target bundleno = 14 (0xe), region = 90 }
 0x464   : > { %s3830_s21 = smov %s3820_s6 }
 0x468   :  { %2380 = vsyncpa [#allocation4], 1 }
 0x469   :  { %2382 = vsyncpa [#allocation4 + $0x1], 1 }
 0x46a   :  { %2383 = vsyncpa [#allocation7], 1 }
 0x46b   :  { %2384 = vsyncpa [#allocation5], 1 }
 0x46c   :  { %2386 = vsyncpa [#allocation5 + $0x1], 1 }

</bundles_post_ra>
